<compile_context>
chip_gen: v7x
topology: tpu7x:2x2x1
jax: 0.10.0
libtpu: 0.0.40
codegen_flags: <defaults>
</compile_context>

<pallas_src>
import jax
import jax.numpy as jnp
from jax.experimental import pallas as pl
from jax.experimental.pallas import tpu as pltpu

EMB_DIM = 64
NUM_HEADS = 4
HEAD_SIZE = EMB_DIM // NUM_HEADS   # 16
BLOCK_SIZE = 64                    # max sequence length (tril buffer size)
FF_DIM = 4 * EMB_DIM
LN_EPS = 1e-5
TARGET_ROWS = 2048                 # target bt*T per grid step (MXU M amortization)


def block_kernel(x_ref,
                 wqkv_ref, bqkv_ref,                   # fused q/k/v (LN1-folded) bf16 / f32
                 wproj_ref, bproj_ref,                 # attn out projection bf16 / f32
                 w1_ref, bff1_ref, w2_ref, bff2_ref,   # feed-forward (LN2-folded) bf16 / f32
                 o_ref):
    bt, T, C = x_ref.shape
    rows = bt * T
    bf16, f32 = jnp.bfloat16, jnp.float32

    x = x_ref[...].reshape(rows, C).astype(f32)                # (rows, C)

    # ---- LayerNorm 1 (gamma/beta folded into wqkv/bqkv) ----
    mu = jnp.mean(x, axis=-1, keepdims=True)
    var = jnp.mean((x - mu) ** 2, axis=-1, keepdims=True)
    y = (x - mu) * jax.lax.rsqrt(var + LN_EPS)

    # ---- fused QKV projection: one (rows, C) @ (C, 3C) bf16 MXU matmul ----
    qkv = jnp.dot(y.astype(bf16), wqkv_ref[...],
                  preferred_element_type=f32) + bqkv_ref[...]   # (rows, 3C) f32
    qkv_bf = qkv.astype(bf16)                                   # single cast for head loop

    # ---- per-head causal attention with fused output projection ----
    row_id = jax.lax.broadcasted_iota(jnp.int32, (T, T), 0)
    col_id = jax.lax.broadcasted_iota(jnp.int32, (T, T), 1)
    causal = col_id <= row_id                                   # tril mask
    inv_sqrt_hs = 1.0 / (float(HEAD_SIZE) ** 0.5)

    wproj = wproj_ref[...]                                      # (C, C) bf16, load once
    attn_acc = None
    for h in range(NUM_HEADS):                                  # static unroll (4 heads)
        lo = h * HEAD_SIZE
        q_h = qkv_bf[:, lo:lo + HEAD_SIZE].reshape(bt, T, HEAD_SIZE)
        k_h = qkv_bf[:, C + lo:C + lo + HEAD_SIZE].reshape(bt, T, HEAD_SIZE)
        v_h = qkv_bf[:, 2 * C + lo:2 * C + lo + HEAD_SIZE].reshape(bt, T, HEAD_SIZE)

        s = jnp.einsum("bqd,bkd->bqk", q_h, k_h,
                       preferred_element_type=f32) * inv_sqrt_hs
        s = jnp.where(causal, s, -jnp.inf)
        s = s - jnp.max(s, axis=-1, keepdims=True)
        p = jnp.exp(s)
        denom = jnp.sum(p, axis=-1, keepdims=True)
        p = p * pl.reciprocal(denom, approx=True)               # EUP slot

        ctx_h = jnp.einsum("bqk,bkd->bqd", p.astype(bf16), v_h,
                           preferred_element_type=f32)          # (bt, T, hs)
        # Fused per-head output projection: sum_h ctx_h @ wproj[h*hs:(h+1)*hs, :]
        proj_h = jnp.dot(ctx_h.reshape(rows, HEAD_SIZE).astype(bf16),
                         wproj[lo:lo + HEAD_SIZE, :],
                         preferred_element_type=f32)            # (rows, C) f32
        attn_acc = proj_h if attn_acc is None else attn_acc + proj_h

    attn = attn_acc + bproj_ref[...]
    x1 = x + attn                                               # residual 1

    # ---- LayerNorm 2 (gamma/beta folded into ff_w1/ff_b1) + FeedForward + residual 2 ----
    mu2 = jnp.mean(x1, axis=-1, keepdims=True)
    var2 = jnp.mean((x1 - mu2) ** 2, axis=-1, keepdims=True)
    y2 = (x1 - mu2) * jax.lax.rsqrt(var2 + LN_EPS)

    h1 = jnp.dot(y2.astype(bf16), w1_ref[...],
                 preferred_element_type=f32) + bff1_ref[...]
    h1 = jnp.maximum(h1, 0.0)                                   # ReLU
    ff = jnp.dot(h1.astype(bf16), w2_ref[...],
                 preferred_element_type=f32) + bff2_ref[...]

    o_ref[...] = (x1 + ff).reshape(bt, T, C).astype(o_ref.dtype)


def _choose_b_tile(B, T):
    """Batch tile sized by rows (bt*T ~ TARGET_ROWS).  Split into >=2 grid steps only
    when each step keeps >= 512 rows (worth it on 2-TC v7x, pure overhead on 1-TC
    v5e/v6e).  Reduce to a divisor of B so there is no ragged / padded last step."""
    bt = max(1, min(B, TARGET_ROWS // max(T, 1)))
    if B > 1:
        half = pl.cdiv(B, 2)
        if half * T >= 512:
            bt = min(bt, half)
    while B % bt != 0:
        bt -= 1
    return bt


def prepare_params(params):
    """One-time weight prep (hoisted out of the forward): fuse QKV, fold LayerNorm
    gamma/beta into the downstream matmuls, cast matmul weights to bf16."""
    f32, bf16 = jnp.float32, jnp.bfloat16
    wqkv = jnp.concatenate([params["wq"], params["wk"], params["wv"]], axis=1)  # (C, 3C)
    wqkv_f = params["ln1_g"].reshape(-1, 1) * wqkv                              # fold gamma1
    bqkv_f = params["ln1_b"] @ wqkv                                             # fold beta1
    w1_f = params["ln2_g"].reshape(-1, 1) * params["ff_w1"]                     # fold gamma2
    b1_f = params["ln2_b"] @ params["ff_w1"] + params["ff_b1"]                  # fold beta2
    return {
        "wqkv": wqkv_f.astype(bf16), "bqkv": bqkv_f.astype(f32),
        "wproj": params["wproj"].astype(bf16), "bproj": params["bproj"].astype(f32),
        "ff_w1": w1_f.astype(bf16), "ff_b1": b1_f.astype(f32),
        "ff_w2": params["ff_w2"].astype(bf16), "ff_b2": params["ff_b2"].astype(f32),
    }


def block_forward(x, prep, b_tile=None):
    """x: (B, T, C) float32.  prep: output of prepare_params()."""
    B, T, C = x.shape
    assert C == EMB_DIM and T <= BLOCK_SIZE

    bt = b_tile if b_tile is not None else _choose_b_tile(B, T)
    grid = (B // bt,)

    param_list = [
        prep["wqkv"], prep["bqkv"],
        prep["wproj"], prep["bproj"],
        prep["ff_w1"], prep["ff_b1"], prep["ff_w2"], prep["ff_b2"],
    ]

    def full_spec(arr):
        nd = arr.ndim
        return pl.BlockSpec(arr.shape, lambda b, _nd=nd: (0,) * _nd)

    in_specs = [pl.BlockSpec((bt, T, C), lambda b: (b, 0, 0))] + \
               [full_spec(p) for p in param_list]

    weight_bytes = sum(int(p.size) * p.dtype.itemsize for p in param_list)
    cost = pl.CostEstimate(
        flops=int(2 * B * T * (12 * C * C + 2 * T * C)),
        transcendentals=int(B * NUM_HEADS * T * T + 2 * B * T),
        bytes_accessed=int(2 * B * T * C * 4 + weight_bytes),
    )

    out = pl.pallas_call(
        block_kernel,
        out_shape=jax.ShapeDtypeStruct((B, T, C), x.dtype),
        grid_spec=pltpu.PrefetchScalarGridSpec(
            num_scalar_prefetch=0,
            grid=grid,
            in_specs=in_specs,
            out_specs=pl.BlockSpec((bt, T, C), lambda b: (b, 0, 0)),
        ),
        compiler_params=pltpu.CompilerParams(
            dimension_semantics=("parallel",)),
        cost_estimate=cost,
    )(x, *param_list)
    return out


def init_params(key):
    """Deterministic parameter init. Linear weights stored as (in, out), f32."""
    ks = jax.random.split(key, 10)
    scale = 0.02
    C, H = EMB_DIM, FF_DIM
    return {
        "ln1_g": jnp.ones((1, C), jnp.float32),
        "ln1_b": jnp.zeros((1, C), jnp.float32),
        "wq": scale * jax.random.normal(ks[0], (C, C), jnp.float32),
        "wk": scale * jax.random.normal(ks[1], (C, C), jnp.float32),
        "wv": scale * jax.random.normal(ks[2], (C, C), jnp.float32),
        "wproj": scale * jax.random.normal(ks[3], (C, C), jnp.float32),
        "bproj": scale * jax.random.normal(ks[4], (1, C), jnp.float32),
        "ln2_g": jnp.ones((1, C), jnp.float32),
        "ln2_b": jnp.zeros((1, C), jnp.float32),
        "ff_w1": scale * jax.random.normal(ks[5], (C, H), jnp.float32),
        "ff_b1": scale * jax.random.normal(ks[6], (1, H), jnp.float32),
        "ff_w2": scale * jax.random.normal(ks[7], (H, C), jnp.float32),
        "ff_b2": scale * jax.random.normal(ks[8], (1, C), jnp.float32),
    }


def block_reference(x, p):
    """Pure-JAX f32 reference of the PyTorch forward, for correctness check."""
    def ln(v, g, b):
        mu = jnp.mean(v, -1, keepdims=True)
        var = jnp.mean((v - mu) ** 2, -1, keepdims=True)
        return (v - mu) / jnp.sqrt(var + LN_EPS) * g + b

    B, T, C = x.shape
    y = ln(x, p["ln1_g"], p["ln1_b"])
    q = y @ p["wq"]; k = y @ p["wk"]; v = y @ p["wv"]
    qh = q.reshape(B, T, NUM_HEADS, HEAD_SIZE).transpose(0, 2, 1, 3)
    kh = k.reshape(B, T, NUM_HEADS, HEAD_SIZE).transpose(0, 2, 1, 3)
    vh = v.reshape(B, T, NUM_HEADS, HEAD_SIZE).transpose(0, 2, 1, 3)
    s = jnp.einsum("bhqd,bhkd->bhqk", qh, kh) / (HEAD_SIZE ** 0.5)
    mask = jnp.tril(jnp.ones((T, T), bool))
    s = jnp.where(mask, s, -jnp.inf)
    w = jax.nn.softmax(s, axis=-1)
    ctx = jnp.einsum("bhqk,bhkd->bhqd", w, vh).transpose(0, 2, 1, 3).reshape(B, T, C)
    x1 = x + ctx @ p["wproj"] + p["bproj"]
    y2 = ln(x1, p["ln2_g"], p["ln2_b"])
    ff = jnp.maximum(y2 @ p["ff_w1"] + p["ff_b1"], 0.0) @ p["ff_w2"] + p["ff_b2"]
    return x1 + ff


if __name__ == "__main__":
    key = jax.random.PRNGKey(0)
    k_x, k_p = jax.random.split(key)

    B, T = 2, 8                       # small shapes; T <= block_size (64)
    x = jax.random.normal(k_x, (B, T, EMB_DIM), jnp.float32)
    params = init_params(k_p)
    prep = prepare_params(params)     # one-time weight fuse/fold/cast (hoisted)

    out = jax.block_until_ready(block_forward(x, prep))
    ref = block_reference(x, params)

    assert out.shape == (B, T, EMB_DIM)
    # bf16 MXU operands (f32 accumulation) + approx softmax reciprocal -> loosened tol
    assert jnp.allclose(out, ref, rtol=2e-2, atol=2e-2), "mismatch vs reference"

    print("KERNEL_OK")
</pallas_src>

<mosaic_0001>
module attributes {stable_mosaic.version = 11 : i64} {
  func.func @block_kernel(%arg0: i32, %arg1: memref<2x8x64xf32, #tpu.memory_space<vmem>>, %arg2: memref<64x192xbf16, #tpu.memory_space<vmem>>, %arg3: memref<1x192xf32, #tpu.memory_space<vmem>>, %arg4: memref<64x64xbf16, #tpu.memory_space<vmem>>, %arg5: memref<1x64xf32, #tpu.memory_space<vmem>>, %arg6: memref<64x256xbf16, #tpu.memory_space<vmem>>, %arg7: memref<1x256xf32, #tpu.memory_space<vmem>>, %arg8: memref<256x64xbf16, #tpu.memory_space<vmem>>, %arg9: memref<1x64xf32, #tpu.memory_space<vmem>>, %arg10: memref<2x8x64xf32, #tpu.memory_space<vmem>>) attributes {dimension_semantics = [#tpu.dimension_semantics<parallel>], iteration_bounds = array<i64: 1>, scalar_prefetch = 0 : i64, scratch_operands = 0 : i64, tpu.core_type = #tpu.core_type<tc>, window_params = [{transform_indices = @transform_0, window_bounds = array<i64: 2, 8, 64>}, {pipeline_mode = #tpu.pipeline_mode<synchronous>, transform_indices = @transform_1, window_bounds = array<i64: 64, 192>}, {pipeline_mode = #tpu.pipeline_mode<synchronous>, transform_indices = @transform_2, window_bounds = array<i64: 1, 192>}, {pipeline_mode = #tpu.pipeline_mode<synchronous>, transform_indices = @transform_3, window_bounds = array<i64: 64, 64>}, {pipeline_mode = #tpu.pipeline_mode<synchronous>, transform_indices = @transform_4, window_bounds = array<i64: 1, 64>}, {pipeline_mode = #tpu.pipeline_mode<synchronous>, transform_indices = @transform_5, window_bounds = array<i64: 64, 256>}, {pipeline_mode = #tpu.pipeline_mode<synchronous>, transform_indices = @transform_6, window_bounds = array<i64: 1, 256>}, {pipeline_mode = #tpu.pipeline_mode<synchronous>, transform_indices = @transform_7, window_bounds = array<i64: 256, 64>}, {pipeline_mode = #tpu.pipeline_mode<synchronous>, transform_indices = @transform_8, window_bounds = array<i64: 1, 64>}, {transform_indices = @transform_9, window_bounds = array<i64: 2, 8, 64>}]} {
    %c0 = arith.constant 0 : index
    %c0_0 = arith.constant 0 : index
    %c0_1 = arith.constant 0 : index
    %0 = vector.load %arg1[%c0, %c0_0, %c0_1] : memref<2x8x64xf32, #tpu.memory_space<vmem>>, vector<2x8x64xf32>
    %1 = vector.shape_cast %0 : vector<2x8x64xf32> to vector<16x64xf32>
    %cst = arith.constant dense<0.000000e+00> : vector<16xf32>
    %2 = vector.multi_reduction <add>, %1, %cst [1] : vector<16x64xf32> to vector<16xf32>
    %3 = vector.shape_cast %2 : vector<16xf32> to vector<16x1xf32>
    %cst_2 = arith.constant 6.400000e+01 : f32
    %4 = vector.broadcast %cst_2 : f32 to vector<16x1xf32>
    %5 = arith.divf %3, %4 : vector<16x1xf32>
    %6 = vector.broadcast %5 : vector<16x1xf32> to vector<16x64xf32>
    %7 = arith.subf %1, %6 : vector<16x64xf32>
    %8 = arith.mulf %7, %7 : vector<16x64xf32>
    %cst_3 = arith.constant dense<0.000000e+00> : vector<16xf32>
    %9 = vector.multi_reduction <add>, %8, %cst_3 [1] : vector<16x64xf32> to vector<16xf32>
    %10 = vector.shape_cast %9 : vector<16xf32> to vector<16x1xf32>
    %cst_4 = arith.constant 6.400000e+01 : f32
    %11 = vector.broadcast %cst_4 : f32 to vector<16x1xf32>
    %12 = arith.divf %10, %11 : vector<16x1xf32>
    %13 = vector.broadcast %5 : vector<16x1xf32> to vector<16x64xf32>
    %14 = arith.subf %1, %13 : vector<16x64xf32>
    %cst_5 = arith.constant 9.99999974E-6 : f32
    %15 = vector.broadcast %cst_5 : f32 to vector<16x1xf32>
    %16 = arith.addf %12, %15 : vector<16x1xf32>
    %17 = math.rsqrt %16 : vector<16x1xf32>
    %18 = vector.broadcast %17 : vector<16x1xf32> to vector<16x64xf32>
    %19 = arith.mulf %14, %18 : vector<16x64xf32>
    %20 = arith.truncf %19 : vector<16x64xf32> to vector<16x64xbf16>
    %c0_6 = arith.constant 0 : index
    %c0_7 = arith.constant 0 : index
    %21 = vector.load %arg2[%c0_6, %c0_7] : memref<64x192xbf16, #tpu.memory_space<vmem>>, vector<64x192xbf16>
    %cst_8 = arith.constant dense<0.000000e+00> : vector<16x192xf32>
    %22 = tpu.matmul %20, %21, %cst_8 {dimension_numbers = #tpu.dot_dimension_numbers<[1], [0], [0], [1], [0, 0, 1, 1], [], []>} : vector<16x64xbf16>, vector<64x192xbf16>, vector<16x192xf32> -> vector<16x192xf32>
    %c0_9 = arith.constant 0 : index
    %c0_10 = arith.constant 0 : index
    %23 = vector.load %arg3[%c0_9, %c0_10] : memref<1x192xf32, #tpu.memory_space<vmem>>, vector<1x192xf32>
    %24 = vector.broadcast %23 : vector<1x192xf32> to vector<16x192xf32>
    %25 = arith.addf %22, %24 : vector<16x192xf32>
    %26 = arith.truncf %25 : vector<16x192xf32> to vector<16x192xbf16>
    %27 = tpu.iota {dimensions = array<i32: 0>} : vector<8x8xi32>
    %28 = tpu.iota {dimensions = array<i32: 1>} : vector<8x8xi32>
    %29 = arith.cmpi sle, %28, %27 : vector<8x8xi32>
    %c0_11 = arith.constant 0 : index
    %c0_12 = arith.constant 0 : index
    %30 = vector.load %arg4[%c0_11, %c0_12] : memref<64x64xbf16, #tpu.memory_space<vmem>>, vector<64x64xbf16>
    %31 = vector.extract_strided_slice %26 {offsets = [0, 0], sizes = [16, 16], strides = [1, 1]} : vector<16x192xbf16> to vector<16x16xbf16>
    %32 = vector.shape_cast %31 : vector<16x16xbf16> to vector<2x8x16xbf16>
    %33 = vector.extract_strided_slice %26 {offsets = [0, 64], sizes = [16, 16], strides = [1, 1]} : vector<16x192xbf16> to vector<16x16xbf16>
    %34 = vector.shape_cast %33 : vector<16x16xbf16> to vector<2x8x16xbf16>
    %35 = vector.extract_strided_slice %26 {offsets = [0, 128], sizes = [16, 16], strides = [1, 1]} : vector<16x192xbf16> to vector<16x16xbf16>
    %36 = vector.shape_cast %35 : vector<16x16xbf16> to vector<2x8x16xbf16>
    "tpu.trace_start"() <{level = 10 : i32, message = "bqd,bkd->bqk"}> : () -> ()
    %cst_13 = arith.constant dense<0.000000e+00> : vector<2x8x8xf32>
    %37 = tpu.matmul %32, %34, %cst_13 {dimension_numbers = #tpu.dot_dimension_numbers<[2], [2], [1], [1], [0, 0, 0, 1, 1, 1], [0], [0]>} : vector<2x8x16xbf16>, vector<2x8x16xbf16>, vector<2x8x8xf32> -> vector<2x8x8xf32>
    "tpu.trace_stop"() : () -> ()
    %cst_14 = arith.constant 2.500000e-01 : f32
    %38 = vector.broadcast %cst_14 : f32 to vector<2x8x8xf32>
    %39 = arith.mulf %37, %38 : vector<2x8x8xf32>
    %cst_15 = arith.constant 0xFF800000 : f32
    %40 = vector.shape_cast %29 : vector<8x8xi1> to vector<1x8x8xi1>
    %41 = vector.broadcast %40 : vector<1x8x8xi1> to vector<2x8x8xi1>
    %42 = vector.broadcast %cst_15 : f32 to vector<2x8x8xf32>
    %43 = arith.select %41, %39, %42 : vector<2x8x8xi1>, vector<2x8x8xf32>
    %cst_16 = arith.constant dense<0xFF800000> : vector<2x8xf32>
    %44 = vector.multi_reduction <maximumf>, %43, %cst_16 [2] : vector<2x8x8xf32> to vector<2x8xf32>
    %45 = vector.shape_cast %44 : vector<2x8xf32> to vector<2x8x1xf32>
    %46 = vector.broadcast %45 : vector<2x8x1xf32> to vector<2x8x8xf32>
    %47 = arith.subf %43, %46 : vector<2x8x8xf32>
    %48 = math.exp %47 : vector<2x8x8xf32>
    %cst_17 = arith.constant dense<0.000000e+00> : vector<2x8xf32>
    %49 = vector.multi_reduction <add>, %48, %cst_17 [2] : vector<2x8x8xf32> to vector<2x8xf32>
    %50 = vector.shape_cast %49 : vector<2x8xf32> to vector<2x8x1xf32>
    %51 = tpu.reciprocal %50 {approx = true} : vector<2x8x1xf32> -> vector<2x8x1xf32>
    %52 = vector.broadcast %51 : vector<2x8x1xf32> to vector<2x8x8xf32>
    %53 = arith.mulf %48, %52 : vector<2x8x8xf32>
    %54 = arith.truncf %53 : vector<2x8x8xf32> to vector<2x8x8xbf16>
    "tpu.trace_start"() <{level = 10 : i32, message = "bqk,bkd->bqd"}> : () -> ()
    %cst_18 = arith.constant dense<0.000000e+00> : vector<2x8x16xf32>
    %55 = tpu.matmul %54, %36, %cst_18 {dimension_numbers = #tpu.dot_dimension_numbers<[2], [1], [1], [2], [0, 0, 0, 1, 1, 2], [0], [0]>} : vector<2x8x8xbf16>, vector<2x8x16xbf16>, vector<2x8x16xf32> -> vector<2x8x16xf32>
    "tpu.trace_stop"() : () -> ()
    %56 = vector.shape_cast %55 : vector<2x8x16xf32> to vector<16x16xf32>
    %57 = arith.truncf %56 : vector<16x16xf32> to vector<16x16xbf16>
    %58 = vector.extract_strided_slice %30 {offsets = [0, 0], sizes = [16, 64], strides = [1, 1]} : vector<64x64xbf16> to vector<16x64xbf16>
    %cst_19 = arith.constant dense<0.000000e+00> : vector<16x64xf32>
    %59 = tpu.matmul %57, %58, %cst_19 {dimension_numbers = #tpu.dot_dimension_numbers<[1], [0], [0], [1], [0, 0, 1, 1], [], []>} : vector<16x16xbf16>, vector<16x64xbf16>, vector<16x64xf32> -> vector<16x64xf32>
    %60 = vector.extract_strided_slice %26 {offsets = [0, 16], sizes = [16, 16], strides = [1, 1]} : vector<16x192xbf16> to vector<16x16xbf16>
    %61 = vector.shape_cast %60 : vector<16x16xbf16> to vector<2x8x16xbf16>
    %62 = vector.extract_strided_slice %26 {offsets = [0, 80], sizes = [16, 16], strides = [1, 1]} : vector<16x192xbf16> to vector<16x16xbf16>
    %63 = vector.shape_cast %62 : vector<16x16xbf16> to vector<2x8x16xbf16>
    %64 = vector.extract_strided_slice %26 {offsets = [0, 144], sizes = [16, 16], strides = [1, 1]} : vector<16x192xbf16> to vector<16x16xbf16>
    %65 = vector.shape_cast %64 : vector<16x16xbf16> to vector<2x8x16xbf16>
    "tpu.trace_start"() <{level = 10 : i32, message = "bqd,bkd->bqk"}> : () -> ()
    %cst_20 = arith.constant dense<0.000000e+00> : vector<2x8x8xf32>
    %66 = tpu.matmul %61, %63, %cst_20 {dimension_numbers = #tpu.dot_dimension_numbers<[2], [2], [1], [1], [0, 0, 0, 1, 1, 1], [0], [0]>} : vector<2x8x16xbf16>, vector<2x8x16xbf16>, vector<2x8x8xf32> -> vector<2x8x8xf32>
    "tpu.trace_stop"() : () -> ()
    %cst_21 = arith.constant 2.500000e-01 : f32
    %67 = vector.broadcast %cst_21 : f32 to vector<2x8x8xf32>
    %68 = arith.mulf %66, %67 : vector<2x8x8xf32>
    %cst_22 = arith.constant 0xFF800000 : f32
    %69 = vector.shape_cast %29 : vector<8x8xi1> to vector<1x8x8xi1>
    %70 = vector.broadcast %69 : vector<1x8x8xi1> to vector<2x8x8xi1>
    %71 = vector.broadcast %cst_22 : f32 to vector<2x8x8xf32>
    %72 = arith.select %70, %68, %71 : vector<2x8x8xi1>, vector<2x8x8xf32>
    %cst_23 = arith.constant dense<0xFF800000> : vector<2x8xf32>
    %73 = vector.multi_reduction <maximumf>, %72, %cst_23 [2] : vector<2x8x8xf32> to vector<2x8xf32>
    %74 = vector.shape_cast %73 : vector<2x8xf32> to vector<2x8x1xf32>
    %75 = vector.broadcast %74 : vector<2x8x1xf32> to vector<2x8x8xf32>
    %76 = arith.subf %72, %75 : vector<2x8x8xf32>
    %77 = math.exp %76 : vector<2x8x8xf32>
    %cst_24 = arith.constant dense<0.000000e+00> : vector<2x8xf32>
    %78 = vector.multi_reduction <add>, %77, %cst_24 [2] : vector<2x8x8xf32> to vector<2x8xf32>
    %79 = vector.shape_cast %78 : vector<2x8xf32> to vector<2x8x1xf32>
    %80 = tpu.reciprocal %79 {approx = true} : vector<2x8x1xf32> -> vector<2x8x1xf32>
    %81 = vector.broadcast %80 : vector<2x8x1xf32> to vector<2x8x8xf32>
    %82 = arith.mulf %77, %81 : vector<2x8x8xf32>
    %83 = arith.truncf %82 : vector<2x8x8xf32> to vector<2x8x8xbf16>
    "tpu.trace_start"() <{level = 10 : i32, message = "bqk,bkd->bqd"}> : () -> ()
    %cst_25 = arith.constant dense<0.000000e+00> : vector<2x8x16xf32>
    %84 = tpu.matmul %83, %65, %cst_25 {dimension_numbers = #tpu.dot_dimension_numbers<[2], [1], [1], [2], [0, 0, 0, 1, 1, 2], [0], [0]>} : vector<2x8x8xbf16>, vector<2x8x16xbf16>, vector<2x8x16xf32> -> vector<2x8x16xf32>
    "tpu.trace_stop"() : () -> ()
    %85 = vector.shape_cast %84 : vector<2x8x16xf32> to vector<16x16xf32>
    %86 = arith.truncf %85 : vector<16x16xf32> to vector<16x16xbf16>
    %87 = vector.extract_strided_slice %30 {offsets = [16, 0], sizes = [16, 64], strides = [1, 1]} : vector<64x64xbf16> to vector<16x64xbf16>
    %cst_26 = arith.constant dense<0.000000e+00> : vector<16x64xf32>
    %88 = tpu.matmul %86, %87, %cst_26 {dimension_numbers = #tpu.dot_dimension_numbers<[1], [0], [0], [1], [0, 0, 1, 1], [], []>} : vector<16x16xbf16>, vector<16x64xbf16>, vector<16x64xf32> -> vector<16x64xf32>
    %89 = arith.addf %59, %88 : vector<16x64xf32>
    %90 = vector.extract_strided_slice %26 {offsets = [0, 32], sizes = [16, 16], strides = [1, 1]} : vector<16x192xbf16> to vector<16x16xbf16>
    %91 = vector.shape_cast %90 : vector<16x16xbf16> to vector<2x8x16xbf16>
    %92 = vector.extract_strided_slice %26 {offsets = [0, 96], sizes = [16, 16], strides = [1, 1]} : vector<16x192xbf16> to vector<16x16xbf16>
    %93 = vector.shape_cast %92 : vector<16x16xbf16> to vector<2x8x16xbf16>
    %94 = vector.extract_strided_slice %26 {offsets = [0, 160], sizes = [16, 16], strides = [1, 1]} : vector<16x192xbf16> to vector<16x16xbf16>
    %95 = vector.shape_cast %94 : vector<16x16xbf16> to vector<2x8x16xbf16>
    "tpu.trace_start"() <{level = 10 : i32, message = "bqd,bkd->bqk"}> : () -> ()
    %cst_27 = arith.constant dense<0.000000e+00> : vector<2x8x8xf32>
    %96 = tpu.matmul %91, %93, %cst_27 {dimension_numbers = #tpu.dot_dimension_numbers<[2], [2], [1], [1], [0, 0, 0, 1, 1, 1], [0], [0]>} : vector<2x8x16xbf16>, vector<2x8x16xbf16>, vector<2x8x8xf32> -> vector<2x8x8xf32>
    "tpu.trace_stop"() : () -> ()
    %cst_28 = arith.constant 2.500000e-01 : f32
    %97 = vector.broadcast %cst_28 : f32 to vector<2x8x8xf32>
    %98 = arith.mulf %96, %97 : vector<2x8x8xf32>
    %cst_29 = arith.constant 0xFF800000 : f32
    %99 = vector.shape_cast %29 : vector<8x8xi1> to vector<1x8x8xi1>
    %100 = vector.broadcast %99 : vector<1x8x8xi1> to vector<2x8x8xi1>
    %101 = vector.broadcast %cst_29 : f32 to vector<2x8x8xf32>
    %102 = arith.select %100, %98, %101 : vector<2x8x8xi1>, vector<2x8x8xf32>
    %cst_30 = arith.constant dense<0xFF800000> : vector<2x8xf32>
    %103 = vector.multi_reduction <maximumf>, %102, %cst_30 [2] : vector<2x8x8xf32> to vector<2x8xf32>
    %104 = vector.shape_cast %103 : vector<2x8xf32> to vector<2x8x1xf32>
    %105 = vector.broadcast %104 : vector<2x8x1xf32> to vector<2x8x8xf32>
    %106 = arith.subf %102, %105 : vector<2x8x8xf32>
    %107 = math.exp %106 : vector<2x8x8xf32>
    %cst_31 = arith.constant dense<0.000000e+00> : vector<2x8xf32>
    %108 = vector.multi_reduction <add>, %107, %cst_31 [2] : vector<2x8x8xf32> to vector<2x8xf32>
    %109 = vector.shape_cast %108 : vector<2x8xf32> to vector<2x8x1xf32>
    %110 = tpu.reciprocal %109 {approx = true} : vector<2x8x1xf32> -> vector<2x8x1xf32>
    %111 = vector.broadcast %110 : vector<2x8x1xf32> to vector<2x8x8xf32>
    %112 = arith.mulf %107, %111 : vector<2x8x8xf32>
    %113 = arith.truncf %112 : vector<2x8x8xf32> to vector<2x8x8xbf16>
    "tpu.trace_start"() <{level = 10 : i32, message = "bqk,bkd->bqd"}> : () -> ()
    %cst_32 = arith.constant dense<0.000000e+00> : vector<2x8x16xf32>
    %114 = tpu.matmul %113, %95, %cst_32 {dimension_numbers = #tpu.dot_dimension_numbers<[2], [1], [1], [2], [0, 0, 0, 1, 1, 2], [0], [0]>} : vector<2x8x8xbf16>, vector<2x8x16xbf16>, vector<2x8x16xf32> -> vector<2x8x16xf32>
    "tpu.trace_stop"() : () -> ()
    %115 = vector.shape_cast %114 : vector<2x8x16xf32> to vector<16x16xf32>
    %116 = arith.truncf %115 : vector<16x16xf32> to vector<16x16xbf16>
    %117 = vector.extract_strided_slice %30 {offsets = [32, 0], sizes = [16, 64], strides = [1, 1]} : vector<64x64xbf16> to vector<16x64xbf16>
    %cst_33 = arith.constant dense<0.000000e+00> : vector<16x64xf32>
    %118 = tpu.matmul %116, %117, %cst_33 {dimension_numbers = #tpu.dot_dimension_numbers<[1], [0], [0], [1], [0, 0, 1, 1], [], []>} : vector<16x16xbf16>, vector<16x64xbf16>, vector<16x64xf32> -> vector<16x64xf32>
    %119 = arith.addf %89, %118 : vector<16x64xf32>
    %120 = vector.extract_strided_slice %26 {offsets = [0, 48], sizes = [16, 16], strides = [1, 1]} : vector<16x192xbf16> to vector<16x16xbf16>
    %121 = vector.shape_cast %120 : vector<16x16xbf16> to vector<2x8x16xbf16>
    %122 = vector.extract_strided_slice %26 {offsets = [0, 112], sizes = [16, 16], strides = [1, 1]} : vector<16x192xbf16> to vector<16x16xbf16>
    %123 = vector.shape_cast %122 : vector<16x16xbf16> to vector<2x8x16xbf16>
    %124 = vector.extract_strided_slice %26 {offsets = [0, 176], sizes = [16, 16], strides = [1, 1]} : vector<16x192xbf16> to vector<16x16xbf16>
    %125 = vector.shape_cast %124 : vector<16x16xbf16> to vector<2x8x16xbf16>
    "tpu.trace_start"() <{level = 10 : i32, message = "bqd,bkd->bqk"}> : () -> ()
    %cst_34 = arith.constant dense<0.000000e+00> : vector<2x8x8xf32>
    %126 = tpu.matmul %121, %123, %cst_34 {dimension_numbers = #tpu.dot_dimension_numbers<[2], [2], [1], [1], [0, 0, 0, 1, 1, 1], [0], [0]>} : vector<2x8x16xbf16>, vector<2x8x16xbf16>, vector<2x8x8xf32> -> vector<2x8x8xf32>
    "tpu.trace_stop"() : () -> ()
    %cst_35 = arith.constant 2.500000e-01 : f32
    %127 = vector.broadcast %cst_35 : f32 to vector<2x8x8xf32>
    %128 = arith.mulf %126, %127 : vector<2x8x8xf32>
    %cst_36 = arith.constant 0xFF800000 : f32
    %129 = vector.shape_cast %29 : vector<8x8xi1> to vector<1x8x8xi1>
    %130 = vector.broadcast %129 : vector<1x8x8xi1> to vector<2x8x8xi1>
    %131 = vector.broadcast %cst_36 : f32 to vector<2x8x8xf32>
    %132 = arith.select %130, %128, %131 : vector<2x8x8xi1>, vector<2x8x8xf32>
    %cst_37 = arith.constant dense<0xFF800000> : vector<2x8xf32>
    %133 = vector.multi_reduction <maximumf>, %132, %cst_37 [2] : vector<2x8x8xf32> to vector<2x8xf32>
    %134 = vector.shape_cast %133 : vector<2x8xf32> to vector<2x8x1xf32>
    %135 = vector.broadcast %134 : vector<2x8x1xf32> to vector<2x8x8xf32>
    %136 = arith.subf %132, %135 : vector<2x8x8xf32>
    %137 = math.exp %136 : vector<2x8x8xf32>
    %cst_38 = arith.constant dense<0.000000e+00> : vector<2x8xf32>
    %138 = vector.multi_reduction <add>, %137, %cst_38 [2] : vector<2x8x8xf32> to vector<2x8xf32>
    %139 = vector.shape_cast %138 : vector<2x8xf32> to vector<2x8x1xf32>
    %140 = tpu.reciprocal %139 {approx = true} : vector<2x8x1xf32> -> vector<2x8x1xf32>
    %141 = vector.broadcast %140 : vector<2x8x1xf32> to vector<2x8x8xf32>
    %142 = arith.mulf %137, %141 : vector<2x8x8xf32>
    %143 = arith.truncf %142 : vector<2x8x8xf32> to vector<2x8x8xbf16>
    "tpu.trace_start"() <{level = 10 : i32, message = "bqk,bkd->bqd"}> : () -> ()
    %cst_39 = arith.constant dense<0.000000e+00> : vector<2x8x16xf32>
    %144 = tpu.matmul %143, %125, %cst_39 {dimension_numbers = #tpu.dot_dimension_numbers<[2], [1], [1], [2], [0, 0, 0, 1, 1, 2], [0], [0]>} : vector<2x8x8xbf16>, vector<2x8x16xbf16>, vector<2x8x16xf32> -> vector<2x8x16xf32>
    "tpu.trace_stop"() : () -> ()
    %145 = vector.shape_cast %144 : vector<2x8x16xf32> to vector<16x16xf32>
    %146 = arith.truncf %145 : vector<16x16xf32> to vector<16x16xbf16>
    %147 = vector.extract_strided_slice %30 {offsets = [48, 0], sizes = [16, 64], strides = [1, 1]} : vector<64x64xbf16> to vector<16x64xbf16>
    %cst_40 = arith.constant dense<0.000000e+00> : vector<16x64xf32>
    %148 = tpu.matmul %146, %147, %cst_40 {dimension_numbers = #tpu.dot_dimension_numbers<[1], [0], [0], [1], [0, 0, 1, 1], [], []>} : vector<16x16xbf16>, vector<16x64xbf16>, vector<16x64xf32> -> vector<16x64xf32>
    %149 = arith.addf %119, %148 : vector<16x64xf32>
    %c0_41 = arith.constant 0 : index
    %c0_42 = arith.constant 0 : index
    %150 = vector.load %arg5[%c0_41, %c0_42] : memref<1x64xf32, #tpu.memory_space<vmem>>, vector<1x64xf32>
    %151 = vector.broadcast %150 : vector<1x64xf32> to vector<16x64xf32>
    %152 = arith.addf %149, %151 : vector<16x64xf32>
    %153 = arith.addf %1, %152 : vector<16x64xf32>
    %cst_43 = arith.constant dense<0.000000e+00> : vector<16xf32>
    %154 = vector.multi_reduction <add>, %153, %cst_43 [1] : vector<16x64xf32> to vector<16xf32>
    %155 = vector.shape_cast %154 : vector<16xf32> to vector<16x1xf32>
    %cst_44 = arith.constant 6.400000e+01 : f32
    %156 = vector.broadcast %cst_44 : f32 to vector<16x1xf32>
    %157 = arith.divf %155, %156 : vector<16x1xf32>
    %158 = vector.broadcast %157 : vector<16x1xf32> to vector<16x64xf32>
    %159 = arith.subf %153, %158 : vector<16x64xf32>
    %160 = arith.mulf %159, %159 : vector<16x64xf32>
    %cst_45 = arith.constant dense<0.000000e+00> : vector<16xf32>
    %161 = vector.multi_reduction <add>, %160, %cst_45 [1] : vector<16x64xf32> to vector<16xf32>
    %162 = vector.shape_cast %161 : vector<16xf32> to vector<16x1xf32>
    %cst_46 = arith.constant 6.400000e+01 : f32
    %163 = vector.broadcast %cst_46 : f32 to vector<16x1xf32>
    %164 = arith.divf %162, %163 : vector<16x1xf32>
    %165 = vector.broadcast %157 : vector<16x1xf32> to vector<16x64xf32>
    %166 = arith.subf %153, %165 : vector<16x64xf32>
    %cst_47 = arith.constant 9.99999974E-6 : f32
    %167 = vector.broadcast %cst_47 : f32 to vector<16x1xf32>
    %168 = arith.addf %164, %167 : vector<16x1xf32>
    %169 = math.rsqrt %168 : vector<16x1xf32>
    %170 = vector.broadcast %169 : vector<16x1xf32> to vector<16x64xf32>
    %171 = arith.mulf %166, %170 : vector<16x64xf32>
    %172 = arith.truncf %171 : vector<16x64xf32> to vector<16x64xbf16>
    %c0_48 = arith.constant 0 : index
    %c0_49 = arith.constant 0 : index
    %173 = vector.load %arg6[%c0_48, %c0_49] : memref<64x256xbf16, #tpu.memory_space<vmem>>, vector<64x256xbf16>
    %cst_50 = arith.constant dense<0.000000e+00> : vector<16x256xf32>
    %174 = tpu.matmul %172, %173, %cst_50 {dimension_numbers = #tpu.dot_dimension_numbers<[1], [0], [0], [1], [0, 0, 1, 1], [], []>} : vector<16x64xbf16>, vector<64x256xbf16>, vector<16x256xf32> -> vector<16x256xf32>
    %c0_51 = arith.constant 0 : index
    %c0_52 = arith.constant 0 : index
    %175 = vector.load %arg7[%c0_51, %c0_52] : memref<1x256xf32, #tpu.memory_space<vmem>>, vector<1x256xf32>
    %176 = vector.broadcast %175 : vector<1x256xf32> to vector<16x256xf32>
    %177 = arith.addf %174, %176 : vector<16x256xf32>
    %cst_53 = arith.constant 0.000000e+00 : f32
    %178 = vector.broadcast %cst_53 : f32 to vector<16x256xf32>
    %179 = arith.maximumf %177, %178 : vector<16x256xf32>
    %180 = arith.truncf %179 : vector<16x256xf32> to vector<16x256xbf16>
    %c0_54 = arith.constant 0 : index
    %c0_55 = arith.constant 0 : index
    %181 = vector.load %arg8[%c0_54, %c0_55] : memref<256x64xbf16, #tpu.memory_space<vmem>>, vector<256x64xbf16>
    %cst_56 = arith.constant dense<0.000000e+00> : vector<16x64xf32>
    %182 = tpu.matmul %180, %181, %cst_56 {dimension_numbers = #tpu.dot_dimension_numbers<[1], [0], [0], [1], [0, 0, 1, 1], [], []>} : vector<16x256xbf16>, vector<256x64xbf16>, vector<16x64xf32> -> vector<16x64xf32>
    %c0_57 = arith.constant 0 : index
    %c0_58 = arith.constant 0 : index
    %183 = vector.load %arg9[%c0_57, %c0_58] : memref<1x64xf32, #tpu.memory_space<vmem>>, vector<1x64xf32>
    %184 = vector.broadcast %183 : vector<1x64xf32> to vector<16x64xf32>
    %185 = arith.addf %182, %184 : vector<16x64xf32>
    %186 = arith.addf %153, %185 : vector<16x64xf32>
    %187 = vector.shape_cast %186 : vector<16x64xf32> to vector<2x8x64xf32>
    %c0_59 = arith.constant 0 : index
    %c0_60 = arith.constant 0 : index
    %c0_61 = arith.constant 0 : index
    %188 = vector.load %arg10[%c0_59, %c0_60, %c0_61] : memref<2x8x64xf32, #tpu.memory_space<vmem>>, vector<2x8x64xf32>
    tpu.vector_store %arg10[%c0_59, %c0_60, %c0_61], %187 {strides = array<i32>} : memref<2x8x64xf32, #tpu.memory_space<vmem>>, vector<2x8x64xf32>,
    return
  }
  func.func @transform_0(%arg0: i32) -> (i32, i32, i32) {
    %c0_i32 = arith.constant 0 : i32
    %c0_i32_0 = arith.constant 0 : i32
    %c0_i32_1 = arith.constant 0 : i32
    return %arg0, %c0_i32, %c0_i32_0 : i32, i32, i32
  }
  func.func @transform_1(%arg0: i32) -> (i32, i32) {
    %c0_i32 = arith.constant 0 : i32
    %c0_i32_0 = arith.constant 0 : i32
    %c0_i32_1 = arith.constant 0 : i32
    return %c0_i32, %c0_i32_0 : i32, i32
  }
  func.func @transform_2(%arg0: i32) -> (i32, i32) {
    %c0_i32 = arith.constant 0 : i32
    %c0_i32_0 = arith.constant 0 : i32
    %c0_i32_1 = arith.constant 0 : i32
    return %c0_i32, %c0_i32_0 : i32, i32
  }
  func.func @transform_3(%arg0: i32) -> (i32, i32) {
    %c0_i32 = arith.constant 0 : i32
    %c0_i32_0 = arith.constant 0 : i32
    %c0_i32_1 = arith.constant 0 : i32
    return %c0_i32, %c0_i32_0 : i32, i32
  }
  func.func @transform_4(%arg0: i32) -> (i32, i32) {
    %c0_i32 = arith.constant 0 : i32
    %c0_i32_0 = arith.constant 0 : i32
    %c0_i32_1 = arith.constant 0 : i32
    return %c0_i32, %c0_i32_0 : i32, i32
  }
  func.func @transform_5(%arg0: i32) -> (i32, i32) {
    %c0_i32 = arith.constant 0 : i32
    %c0_i32_0 = arith.constant 0 : i32
    %c0_i32_1 = arith.constant 0 : i32
    return %c0_i32, %c0_i32_0 : i32, i32
  }
  func.func @transform_6(%arg0: i32) -> (i32, i32) {
    %c0_i32 = arith.constant 0 : i32
    %c0_i32_0 = arith.constant 0 : i32
    %c0_i32_1 = arith.constant 0 : i32
    return %c0_i32, %c0_i32_0 : i32, i32
  }
  func.func @transform_7(%arg0: i32) -> (i32, i32) {
    %c0_i32 = arith.constant 0 : i32
    %c0_i32_0 = arith.constant 0 : i32
    %c0_i32_1 = arith.constant 0 : i32
    return %c0_i32, %c0_i32_0 : i32, i32
  }
  func.func @transform_8(%arg0: i32) -> (i32, i32) {
    %c0_i32 = arith.constant 0 : i32
    %c0_i32_0 = arith.constant 0 : i32
    %c0_i32_1 = arith.constant 0 : i32
    return %c0_i32, %c0_i32_0 : i32, i32
  }
  func.func @transform_9(%arg0: i32) -> (i32, i32, i32) {
    %c0_i32 = arith.constant 0 : i32
    %c0_i32_0 = arith.constant 0 : i32
    %c0_i32_1 = arith.constant 0 : i32
    return %arg0, %c0_i32, %c0_i32_0 : i32, i32, i32
  }
}

</mosaic_0001>

<bundles_post_ra>
// kernel: tpu_custom_call.1
= control target key start
LH: loop header
LB: loop body
LE: loop exit
PB: predicated region body
PF: predicated region fallthrough
CT: control target
= control target key end

     0   :  { %vm36_vm0 = vcmask 523264   ;;  %s2453_s0 = inlined_call_operand.vmem [shape: f32[2,8,64], index: 0, kind: input, shape index: {}]   ;;  %s2454_s1 = inlined_call_operand.vmem [shape: bf16[64,192], index: 1, kind: input, shape index: {}]   ;;  %s2455_s2 = inlined_call_operand.vmem [shape: f32[1,192], index: 2, kind: input, shape index: {}]   ;;  %s2456_s3 = inlined_call_operand.vmem [shape: bf16[64,64], index: 3, kind: input, shape index: {}]   ;;  %s2457_s4 = inlined_call_operand.vmem [shape: f32[1,64], index: 4, kind: input, shape index: {}]   ;;  %s2458_s5 = inlined_call_operand.vmem [shape: bf16[64,256], index: 5, kind: input, shape index: {}]   ;;  %s2459_s6 = inlined_call_operand.vmem [shape: f32[1,256], index: 6, kind: input, shape index: {}]   ;;  %s2460_s7 = inlined_call_operand.vmem [shape: bf16[256,64], index: 7, kind: input, shape index: {}]   ;;  %s2461_s8 = inlined_call_operand.vmem [shape: f32[1,64], index: 8, kind: input, shape index: {}]   ;;  %s2462_s9 = inlined_call_operand.hbm [shape: f32[2,8,64], index: 9, kind: output, shape index: {}]  }
   0x1   :  { %v2080_v0 = vld [vmem:[%s2453_s0] sm:$0xff]  ;;  %v2085_v1 = vld [vmem:[%s2453_s0 + $0x8] sm:$0xff] }
   0x2   :  { %v37_v2 = vsel %vm36_vm0, %v2080_v0, 0.0  ;;  %v40_v3 = vsel %vm36_vm0, %v2085_v1, 0.0 }
   0x3   :  { %38 = vadd.xlane.f32.xlu0 %v37_v2 }
   0x7   :  { %41 = vadd.xlane.f32.xlu0 %v40_v3 }
   0x8   :  { %14 = vsyncpa [#allocation3], 0  ;;  %v1906_v14 = vld [vmem:[%s2454_s1 + $0x4] ss:$8 sps:$4 sm:$0xff]   ;;  %v1908_v15 = vld [vmem:[%s2454_s1] ss:$8 sps:$4 sm:$0xff]   ;;  %v75_v34 = vlaneseq }
   0x9   :  { %128 = vmatprep.subr.bf16.mxu0 %v1906_v14  ;;  %v1909_v16 = vld [vmem:[%s2454_s1 + $0x14] ss:$8 sps:$4 sm:$0xff]   ;;  %v1911_v17 = vld [vmem:[%s2454_s1 + $0x10] ss:$8 sps:$4 sm:$0xff]   ;;  %v1912_v18 = vld [vmem:[%s2454_s1 + $0x24] ss:$8 sps:$4 sm:$0xff]  }
   0xa   :  { %129 = vmatpush1.bf16.msra.mxu0 %v1908_v15  ;;  %v2014_v19 = vmov 0   ;;  %v1914_v20 = vld [vmem:[%s2454_s1 + $0x20] ss:$8 sps:$4 sm:$0xff]   ;;  %v1915_v21 = vld [vmem:[%s2454_s1 + $0x34] ss:$8 sps:$4 sm:$0xff]   ;;  %v2121_v35 = vshrl.u32 %v75_v34, 7 }
   0xb   :  { %130 = vmatprep.subr.bf16.mxu0 %v1909_v16  ;;  %160 = vmatprep.mubr.bf16.mxu0 %v2014_v19  ;;  %v1917_v22 = vld [vmem:[%s2454_s1 + $0x30] ss:$8 sps:$4 sm:$0xff]   ;;  %v2015_v36 = vmov 0.0   ;;  %v73_v38 = vld [vmem:[%s2455_s2] sm:$0x3]  ;;  %vm2016_vm1 = vmmov 0  }
   0xc   :  { %1779 = vmatprep.subr.bf16.mxu1 %v2015_v36  ;;  %v77_v37 = vsub.s32 0, %v2121_v35  ;;  %1781 = vmatprep.mubr.msk.bf16.mxu1 %vm2016_vm1, %v2015_v36  ;;  %s2017_s2 = smov 64   ;;  %v81_v48 = vsub.s32 1, %v2121_v35  ;;  %vm198_vm2 = vcmask 130048   ;;  %vm327_vm3 = vcmask 1043456   ;;  %s2018_s29 = smov 48  }
   0xd   :  { %v176_v60 = vand.u32 127, %v75_v34  ;;  %vm299_vm5 = vcmask 64512   ;;  %s2019_s30 = smov 112   ;;  %s2020_s10 = smov 32  }
   0xe   :  { %131 = vmatpush1.bf16.msra.mxu0 %v1911_v17  ;;  %v78_v39 = vrot.slane %v73_v38, %v77_v37  ;;  %v82_v49 = vrot.slane %v73_v38, %v81_v48  ;;  %s2021_s11 = smov 96   ;;  %s2022_s15 = smov 16  }
   0xf   :  { %132 = vmatprep.subr.bf16.mxu0 %v1912_v18  ;;  %vm2167_vm4 = vcmp.le.s32.totalorder %v176_v60, %v2121_v35  ;;  %s2023_s16 = smov 80   ;;  %v1690_v35 = vld [vmem:[%s2461_s8] ss:$0 sm:$0xff]  ;;  %s2024_s20 = smov [#allocation2]  }
  0x12   :  { %133 = vmatpush1.bf16.msra.mxu0 %v1914_v20 }
  0x13   :  { %134 = vmatprep.subr.bf16.mxu0 %v1915_v21 }
  0x16   :  { %135 = vmatpush1.bf16.msra.mxu0 %v1917_v22 }
  0x17   :  { %1773 = vmatprep.subr.bf16.mxu0 %v2015_v36 }
  0x90   :  { %v39_v4 = vpop.xlane.xlu0 %38 }
  0x91   :  { %v44_v5 = vmul.f32 0.015625, %v39_v4 }
  0x93   :  { %v46_v6 = vsub.f32 %v2080_v0, %v44_v5 }
  0x94   :  { %v42_v7 = vpop.xlane.xlu0 %41 }
  0x95   :  { %v45_v8 = vmul.f32 0.015625, %v42_v7  ;;  %v48_v9 = vmul.f32 %v46_v6, %v46_v6 }
  0x97   :  { %v47_v10 = vsub.f32 %v2085_v1, %v45_v8  ;;  %v50_v11 = vsel %vm36_vm0, %v48_v9, 0.0 }
  0x98   :  { %51 = vadd.xlane.f32.xlu1 %v50_v11 }
  0x99   :  { %v49_v12 = vmul.f32 %v47_v10, %v47_v10 }
  0x9b   :  { %v53_v13 = vsel %vm36_vm0, %v49_v12, 0.0 }
  0x9c   :  { %54 = vadd.xlane.f32.xlu1 %v53_v13 }
 0x125   :  { %v52_v23 = vpop.xlane.xlu1 %51 }
 0x126   :  { %v56_v24 = vmul.f32 0.015625, %v52_v23 }
 0x128   :  { %v58_v25 = vadd.f32 1e-05, %v56_v24 }
 0x129   :  { %v55_v26 = vpop.xlane.xlu1 %54 }
 0x12a   :  { %v57_v27 = vmul.f32 0.015625, %v55_v26  ;;  %1950 = vrsqrt.f32 %v58_v25 }
 0x12c   :  { %v59_v28 = vadd.f32 1e-05, %v57_v27 }
 0x12e   :  { %1952 = vrsqrt.f32 %v59_v28 }
 0x134   :  { %v1951_v29 = vpop.eup %1950 }
 0x135   :  { %v62_v31 = vmul.f32 %v1951_v29, %v46_v6 }
 0x138   :  { %v1953_v30 = vpop.eup %1952 }
 0x139   :  { %v63_v32 = vmul.f32 %v1953_v30, %v47_v10 }
 0x13b   :  { %v64_v33 = vpack.c.bf16 %v63_v32, %v62_v31 }
 0x13d   :  { %1651 = vmatmul.mubr.msk.bf16.vlgmr.msra.gmra.mrb[0].mxu0 %vm36_vm0, %v64_v33 }
 0x13e   :  { %1775 = vmatprep.mubr.msk.bf16.mxu0 %vm2016_vm1, %v2015_v36 }
 0x210   :  { %v162_v40 = vpop.f32.mrb[0].mxu0 }
 0x211   :  { %v163_v41 = vadd.f32 %v162_v40, %v78_v39  ;;  %v164_v42 = vpop.f32.mrb[1].mxu0 }
 0x212   :  { %v166_v43 = vpop.f32.mrb[2].mxu0  ;;  %v165_v51 = vadd.f32 %v164_v42, %v82_v49 }
 0x213   :  { %v2135_v44 = vpack.c.bf16 %v163_v41, %v163_v41  ;;  %v167_v45 = vadd.f32 %v166_v43, %v78_v39  ;;  %v168_v46 = vpop.f32.mrb[3].mxu0 }
 0x214   :  { %v169_v54 = vadd.f32 %v168_v46, %v82_v49  ;;  %v2147_v56 = vpack.c.bf16 %v165_v51, %v165_v51 }
 0x215   :  { %v2137_v47 = vpack.c.bf16 %v167_v45, %v167_v45  ;;  %196 = vrot.lane.b32.xlu0 %v2135_v44, %s2017_s2 }
 0x216   :  { %v2150_v57 = vpack.c.bf16 %v169_v54, %v169_v54  ;;  %v329_v58 = vsel %vm327_vm3, %v2147_v56, 0 }
 0x217   :  { %245 = vrot.lane.b32.xlu1 %v2137_v47, %s2017_s2 }
 0x218   :  { %v375_v59 = vsel %vm327_vm3, %v2150_v57, 0 }
 0x287   :  { %v197_v50 = vpop.permute.xlu0 %196 }
 0x288   :  { %v203_v52 = vsel %vm198_vm2, %v197_v50, 0 }
 0x289   :  { %v246_v53 = vpop.permute.xlu1 %245  ;;  %1774 = vmatpush3.bf16.xpose.msra.mxu0 %v203_v52 }
 0x28a   :  { %v251_v55 = vsel %vm198_vm2, %v246_v53, 0  ;;  %1785 = vmatprep.subr.bf16.mxu0 %v2015_v36 }
 0x28b   :  { %1780 = vmatpush3.bf16.xpose.msra.mxu1 %v251_v55 }
 0x28c   :  { %1791 = vmatprep.subr.bf16.mxu1 %v2015_v36 }
 0x290   :  { %1776 = vmatmul.mubr.msk.bf16.vlgmr.msra.gmra.mrb[4].mxu0 %vm198_vm2, %v2135_v44 }
 0x291   :  { %1786 = vmatpush3.bf16.msra.mxu0 %v329_v58  ;;  %1787 = vmatprep.mubr.msk.bf16.mxu0 %vm2016_vm1, %v2015_v36 }
 0x292   :  { %1782 = vmatmul.mubr.msk.bf16.vlgmr.msra.gmra.mrb[0].mxu1 %vm198_vm2, %v2137_v47  ;;  %1797 = vmatprep.subr.bf16.mxu0 %v2015_v36 }
 0x293   :  { %1792 = vmatpush3.bf16.msra.mxu1 %v375_v59  ;;  %1793 = vmatprep.mubr.msk.bf16.mxu1 %vm2016_vm1, %v2015_v36 }
 0x294   :  { %1803 = vmatprep.subr.bf16.mxu1 %v2015_v36 }
 0x363   :  { %v239_v62 = vpop.f32.mrb[4].mxu0 }
 0x364   :  { %v293_v63 = vmul.f32 0.25, %v239_v62  ;;  %v1777_v2 = vpop.f32.mrb[5].mxu0 }
 0x365   :  { %v242_v3 = vpop.f32.mrb[6].mxu0  ;;  %v287_v4 = vpop.f32.mrb[0].mxu1 }
 0x366   :  { %v294_v5 = vmul.f32 0.25, %v287_v4  ;;  %v1778_v6 = vpop.f32.mrb[7].mxu0  ;;  %v1783_v7 = vpop.f32.mrb[1].mxu1  ;;  %v297_v8 = vsel %vm2167_vm4, %v293_v63, -inf }
 0x367   :  { %v290_v9 = vpop.f32.mrb[2].mxu1  ;;  %v300_v10 = vsel %vm299_vm5, %v297_v8, -inf }
 0x368   :  { %v1784_v11 = vpop.f32.mrb[3].mxu1  ;;  %301 = vmax.xlane.f32.xlu1 %v300_v10  ;;  %v298_v12 = vsel %vm2167_vm4, %v294_v5, -inf }
 0x369   :  { %v303_v13 = vsel %vm299_vm5, %v298_v12, -inf }
 0x36a   :  { %304 = vmax.xlane.f32.xlu0 %v303_v13 }
 0x379   :  { %470 = vrot.lane.b32.xlu1 %v2137_v47, %s2018_s29 }
 0x3f5   :  { %v302_v14 = vpop.xlane.xlu1 %301 }
 0x3f6   :  { %v306_v15 = vsub.f32 %v297_v8, %v302_v14 }
 0x3f7   :  { %v305_v16 = vpop.xlane.xlu0 %304 }
 0x3f8   :  { %v308_v17 = vmul.f32 1.442695, %v306_v15  ;;  %v307_v18 = vsub.f32 %v298_v12, %v305_v16 }
 0x3f9   :  { %v471_v25 = vpop.permute.xlu1 %470 }
 0x3fa   :  { %1954 = vpow2.f32 %v308_v17  ;;  %v310_v20 = vmul.f32 1.442695, %v307_v18  ;;  %v476_v39 = vsel %vm198_vm2, %v471_v25, 0 }
 0x3fc   :  { %1956 = vpow2.f32 %v310_v20 }
 0x404   :  { %v1955_v21 = vpop.eup %1954 }
 0x405   :  { %v312_v22 = vsel %vm299_vm5, %v1955_v21, 0.0 }
 0x406   :  { %v1957_v23 = vpop.eup %1956  ;;  %313 = vadd.xlane.f32.xlu0 %v312_v22 }
 0x407   :  { %v315_v24 = vsel %vm299_vm5, %v1957_v23, 0.0 }
 0x408   :  { %316 = vadd.xlane.f32.xlu1 %v315_v24 }
 0x419   :  { %418 = vrot.lane.b32.xlu1 %v2135_v44, %s2019_s30 }
 0x41c   :  { %420 = vrot.lane.b32.xlu0 %v2135_v44, %s2018_s29 }
 0x41d   :  { %468 = vrot.lane.b32.xlu1 %v2137_v47, %s2019_s30 }
 0x493   :  { %v314_v26 = vpop.xlane.xlu0 %313 }
 0x494   :  { %1958 = vrcp.f32 %v314_v26 }
 0x495   :  { %v317_v27 = vpop.xlane.xlu1 %316 }
 0x496   :  { %1960 = vrcp.f32 %v317_v27 }
 0x497   :  { %v421_v31 = vpop.permute.xlu0 %420 }
 0x498   :  { %v426_v34 = vsel %vm198_vm2, %v421_v31, 0 }
 0x499   :  { %v419_v40 = vpop.permute.xlu1 %418 }
 0x49d   :  { %v469_v41 = vpop.permute.xlu1 %468 }
 0x49e   :  { %v1959_v28 = vpop.eup %1958 }
 0x49f   :  { %v320_v29 = vmul.f32 %v1959_v28, %v1955_v21  ;;  %v1919_v28 = vld [vmem:[%s2456_s3 + $0x8] sm:$0xff]  }
 0x4a0   :  { %v1961_v30 = vpop.eup %1960 }
 0x4a1   :  { %v321_v32 = vmul.f32 %v1961_v30, %v1957_v23  ;;  %v322_v33 = vpack.c.bf16 %v320_v29, %v320_v29 }
 0x4a3   :  { %1788 = vmatmul.mubr.msk.bf16.vlgmr.msra.gmra.mrb[8].mxu0 %vm299_vm5, %v322_v33  ;;  %v323_v38 = vpack.c.bf16 %v321_v32, %v321_v32  ;;  %v1918_v32 = vld [vmem:[%s2456_s3] sm:$0xff]  }
 0x4a4   :  { %1798 = vmatpush3.bf16.xpose.msra.mxu0 %v426_v34  ;;  %1799 = vmatprep.mubr.msk.bf16.mxu0 %vm2016_vm1, %v2015_v36 }
 0x4a5   :  { %1794 = vmatmul.mubr.msk.bf16.vlgmr.msra.gmra.mrb[4].mxu1 %vm299_vm5, %v323_v38  ;;  %1809 = vmatprep.subr.bf16.mxu0 %v2015_v36 }
 0x4a6   :  { %1804 = vmatpush3.bf16.xpose.msra.mxu1 %v476_v39  ;;  %1805 = vmatprep.mubr.msk.bf16.mxu1 %vm2016_vm1, %v2015_v36 }
 0x4a7   :  { %1815 = vmatprep.subr.bf16.mxu1 %v2015_v36 }
 0x4ab   :  { %1800 = vmatmul.mubr.msk.bf16.vlgmr.msra.gmra.mrb[12].mxu0 %vm198_vm2, %v419_v40 }
 0x4ac   :  { %1811 = vmatprep.mubr.msk.bf16.mxu0 %vm2016_vm1, %v2015_v36 }
 0x4ad   :  { %1806 = vmatmul.mubr.msk.bf16.vlgmr.msra.gmra.mrb[8].mxu1 %vm198_vm2, %v469_v41 }
 0x4ae   :  { %1817 = vmatprep.mubr.msk.bf16.mxu1 %vm2016_vm1, %v2015_v36 }
 0x576   :  { %v2201_v42 = vpop.f32.mrb[8].mxu0 }
 0x577   :  { %v1789_v43 = vpop.f32.mrb[9].mxu0 }
 0x578   :  { %v368_v45 = vpop.f32.mrb[10].mxu0  ;;  %v2203_v46 = vpop.f32.mrb[4].mxu1 }
 0x579   :  { %v417_v49 = vpack.c.bf16 %v2203_v46, %v2201_v42  ;;  %v1790_v50 = vpop.f32.mrb[11].mxu0  ;;  %v1795_v51 = vpop.f32.mrb[5].mxu1 }
 0x57a   :  { %v414_v52 = vpop.f32.mrb[6].mxu1 }
 0x57b   :  { %v1796_v53 = vpop.f32.mrb[7].mxu1 }
 0x57e   :  { %v462_v54 = vpop.f32.mrb[12].mxu0 }
 0x57f   :  { %v518_v55 = vmul.f32 0.25, %v462_v54  ;;  %v1801_v58 = vpop.f32.mrb[13].mxu0 }
 0x580   :  { %v465_v59 = vpop.f32.mrb[14].mxu0  ;;  %v512_v60 = vpop.f32.mrb[8].mxu1 }
 0x581   :  { %v519_v62 = vmul.f32 0.25, %v512_v60  ;;  %v1802_v63 = vpop.f32.mrb[15].mxu0  ;;  %v1807_v2 = vpop.f32.mrb[9].mxu1  ;;  %v520_v3 = vsel %vm2167_vm4, %v518_v55, -inf }
 0x582   :  { %v515_v4 = vpop.f32.mrb[10].mxu1  ;;  %v522_v5 = vsel %vm299_vm5, %v520_v3, -inf }
 0x583   :  { %v1808_v6 = vpop.f32.mrb[11].mxu1  ;;  %523 = vmax.xlane.f32.xlu0 %v522_v5  ;;  %v521_v7 = vsel %vm2167_vm4, %v519_v62, -inf }
 0x584   :  { %v525_v8 = vsel %vm299_vm5, %v521_v7, -inf }
 0x585   :  { %526 = vmax.xlane.f32.xlu1 %v525_v8 }
 0x596   :  { %594 = vrot.lane.b32.xlu1 %v2150_v57, %s2019_s30 }
 0x59a   :  { %745 = vrot.lane.b32.xlu1 %v2135_v44, %s2020_s10 }
 0x59e   :  { %795 = vrot.lane.b32.xlu1 %v2137_v47, %s2020_s10 }
 0x5a2   :  { %793 = vrot.lane.b32.xlu1 %v2137_v47, %s2021_s11 }
 0x610   :  { %v524_v9 = vpop.xlane.xlu0 %523 }
 0x611   :  { %v528_v10 = vsub.f32 %v520_v3, %v524_v9 }
 0x612   :  { %v527_v11 = vpop.xlane.xlu1 %526 }
 0x613   :  { %v530_v12 = vmul.f32 1.442695, %v528_v10  ;;  %v529_v13 = vsub.f32 %v521_v7, %v527_v11 }
 0x615   :  { %1962 = vpow2.f32 %v530_v12  ;;  %v532_v14 = vmul.f32 1.442695, %v529_v13 }
 0x616   :  { %v595_v15 = vpop.permute.xlu1 %594 }
 0x617   :  { %1964 = vpow2.f32 %v532_v14  ;;  %v600_v16 = vsel %vm327_vm3, %v595_v15, 0 }
 0x618   :  { %1816 = vmatpush3.bf16.msra.mxu1 %v600_v16 }
 0x619   :  { %1827 = vmatprep.subr.bf16.mxu1 %v2015_v36 }
 0x61a   :  { %v746_v34 = vpop.permute.xlu1 %745 }
 0x61b   :  { %v751_v52 = vsel %vm198_vm2, %v746_v34, 0 }
 0x61e   :  { %v796_v38 = vpop.permute.xlu1 %795 }
 0x61f   :  { %v1963_v17 = vpop.eup %1962  ;;  %v801_v39 = vsel %vm198_vm2, %v796_v38, 0 }
 0x620   :  { %v534_v18 = vsel %vm299_vm5, %v1963_v17, 0.0 }
 0x621   :  { %v1965_v20 = vpop.eup %1964  ;;  %535 = vadd.xlane.f32.xlu0 %v534_v18 }
 0x622   :  { %v537_v21 = vsel %vm299_vm5, %v1965_v20, 0.0  ;;  %v794_v40 = vpop.permute.xlu1 %793 }
 0x625   :  { %538 = vadd.xlane.f32.xlu0 %v537_v21 }
 0x63b   :  { %546 = vrot.lane.b32.xlu0 %v2147_v56, %s2019_s30 }
 0x63f   :  { %743 = vrot.lane.b32.xlu0 %v2135_v44, %s2021_s11 }
 0x6ae   :  { %v536_v22 = vpop.xlane.xlu0 %535 }
 0x6af   :  { %1966 = vrcp.f32 %v536_v22 }
 0x6b2   :  { %v539_v23 = vpop.xlane.xlu0 %538 }
 0x6b3   :  { %1968 = vrcp.f32 %v539_v23 }
 0x6b6   :  { %v547_v24 = vpop.permute.xlu0 %546 }
 0x6b7   :  { %v552_v25 = vsel %vm327_vm3, %v547_v24, 0 }
 0x6b8   :  { %1810 = vmatpush3.bf16.msra.mxu0 %v552_v25 }
 0x6b9   :  { %v1967_v26 = vpop.eup %1966  ;;  %1821 = vmatprep.subr.bf16.mxu0 %v2015_v36 }
 0x6ba   :  { %v542_v27 = vmul.f32 %v1967_v26, %v1963_v17  ;;  %v744_v58 = vpop.permute.xlu0 %743 }
 0x6bc   :  { %v544_v29 = vpack.c.bf16 %v542_v27, %v542_v27 }
 0x6bd   :  { %v1969_v30 = vpop.eup %1968 }
 0x6be   :  { %v543_v31 = vmul.f32 %v1969_v30, %v1965_v20  ;;  %1812 = vmatmul.mubr.msk.bf16.vlgmr.msra.gmra.mrb[16].mxu0 %vm299_vm5, %v544_v29 }
 0x6bf   :  { %1822 = vmatpush3.bf16.msra.mxu0 %v1919_v28  ;;  %1823 = vmatprep.mubr.msk.bf16.mxu0 %vm2016_vm1, %v2015_v36 }
 0x6c0   :  { %v545_v33 = vpack.c.bf16 %v543_v31, %v543_v31  ;;  %1833 = vmatprep.subr.bf16.mxu0 %v2015_v36 }
 0x6c2   :  { %1818 = vmatmul.mubr.msk.bf16.vlgmr.msra.gmra.mrb[12].mxu1 %vm299_vm5, %v545_v33 }
 0x6c3   :  { %1828 = vmatpush3.bf16.msra.mxu1 %v1918_v32  ;;  %1829 = vmatprep.mubr.msk.bf16.mxu1 %vm2016_vm1, %v2015_v36 }
 0x6c4   :  { %1839 = vmatprep.subr.bf16.mxu1 %v2015_v36 }
 0x6ca   :  { %1830 = vmatmul.mubr.msk.bf16.vlgmr.msra.gmra.mrb[16].mxu1 %vm198_vm2, %v417_v49 }
 0x6cb   :  { %1841 = vmatprep.mubr.msk.bf16.mxu1 %vm2016_vm1, %v2015_v36 }
 0x6cc   :  { %1840 = vmatpush3.bf16.xpose.msra.mxu1 %v801_v39 }
 0x6cd   :  { %1851 = vmatprep.subr.bf16.mxu1 %v2015_v36 }
 0x6d3   :  { %1842 = vmatmul.mubr.msk.bf16.vlgmr.msra.gmra.mrb[20].mxu1 %vm198_vm2, %v794_v40 }
 0x6d4   :  { %1853 = vmatprep.mubr.msk.bf16.mxu1 %vm2016_vm1, %v2015_v36 }
 0x791   :  { %v588_v41 = vpop.f32.mrb[16].mxu0 }
 0x792   :  { %v1813_v43 = vpop.f32.mrb[17].mxu0 }
 0x793   :  { %v591_v45 = vpop.f32.mrb[18].mxu0 }
 0x794   :  { %v1814_v42 = vpop.f32.mrb[19].mxu0 }
 0x795   :  { %v636_v46 = vpop.f32.mrb[12].mxu1 }
 0x796   :  { %v642_v49 = vpack.c.bf16 %v636_v46, %v588_v41  ;;  %v1819_v50 = vpop.f32.mrb[13].mxu1 }
 0x797   :  { %v639_v51 = vpop.f32.mrb[14].mxu1 }
 0x798   :  { %v1820_v53 = vpop.f32.mrb[15].mxu1  ;;  %1824 = vmatmul.mubr.msk.bf16.vlgmr.msra.gmra.mrb[20].mxu0 %vm198_vm2, %v642_v49 }
 0x799   :  { %1834 = vmatpush3.bf16.xpose.msra.mxu0 %v751_v52  ;;  %1835 = vmatprep.mubr.msk.bf16.mxu0 %vm2016_vm1, %v2015_v36 }
 0x79a   :  { %1845 = vmatprep.subr.bf16.mxu0 %v2015_v36 }
 0x79d   :  { %v736_v54 = vpop.f32.mrb[16].mxu1 }
 0x79e   :  { %v1831_v55 = vpop.f32.mrb[17].mxu1 }
 0x79f   :  { %v739_v59 = vpop.f32.mrb[18].mxu1 }
 0x7a0   :  { %v1832_v60 = vpop.f32.mrb[19].mxu1  ;;  %1836 = vmatmul.mubr.msk.bf16.vlgmr.msra.gmra.mrb[24].mxu0 %vm198_vm2, %v744_v58 }
 0x7a1   :  { %1847 = vmatprep.mubr.msk.bf16.mxu0 %vm2016_vm1, %v2015_v36 }
 0x7a6   :  { %v837_v62 = vpop.f32.mrb[20].mxu1 }
 0x7a7   :  { %v844_v63 = vmul.f32 0.25, %v837_v62  ;;  %v1843_v2 = vpop.f32.mrb[21].mxu1 }
 0x7a8   :  { %v840_v3 = vpop.f32.mrb[22].mxu1 }
 0x7a9   :  { %v1844_v4 = vpop.f32.mrb[23].mxu1  ;;  %v846_v5 = vsel %vm2167_vm4, %v844_v63, -inf }
 0x7aa   :  { %v850_v6 = vsel %vm299_vm5, %v846_v5, -inf }
 0x7ab   :  { %851 = vmax.xlane.f32.xlu1 %v850_v6 }
 0x7bc   :  { %919 = vrot.lane.b32.xlu1 %v2150_v57, %s2021_s11 }
 0x7c0   :  { %1022 = vrot.lane.b32.xlu1 %v2135_v44, %s2022_s15 }
 0x7c4   :  { %1072 = vrot.lane.b32.xlu1 %v2137_v47, %s2022_s15 }
 0x7c8   :  { %1070 = vrot.lane.b32.xlu1 %v2137_v47, %s2023_s16 }
 0x838   :  { %v852_v7 = vpop.xlane.xlu1 %851 }
 0x839   :  { %v854_v10 = vsub.f32 %v846_v5, %v852_v7 }
 0x83b   :  { %v857_v11 = vmul.f32 1.442695, %v854_v10 }
 0x83c   :  { %v920_v8 = vpop.permute.xlu1 %919 }
 0x83d   :  { %v925_v9 = vsel %vm327_vm3, %v920_v8, 0  ;;  %1970 = vpow2.f32 %v857_v11 }
 0x83e   :  { %1852 = vmatpush3.bf16.msra.mxu1 %v925_v9 }
 0x83f   :  { %1863 = vmatprep.subr.bf16.mxu1 %v2015_v36 }
 0x840   :  { %v1023_v38 = vpop.permute.xlu1 %1022 }
 0x841   :  { %v1028_v40 = vsel %vm198_vm2, %v1023_v38, 0 }
 0x844   :  { %v1073_v3 = vpop.permute.xlu1 %1072 }
 0x845   :  { %v1078_v8 = vsel %vm198_vm2, %v1073_v3, 0 }
 0x847   :  { %v1971_v25 = vpop.eup %1970 }
 0x848   :  { %v862_v26 = vsel %vm299_vm5, %v1971_v25, 0.0  ;;  %v1071_v10 = vpop.permute.xlu1 %1070 }
 0x86b   :  { %v686_v12 = vpop.f32.mrb[20].mxu0 }
 0x86c   :  { %v2273_v13 = vadd.f32 %v736_v54, %v686_v12  ;;  %v1825_v14 = vpop.f32.mrb[21].mxu0  ;;  %v1920_v54 = vld [vmem:[%s2456_s3 + $0x10] sm:$0xff]  }
 0x86d   :  { %v689_v15 = vpop.f32.mrb[22].mxu0 }
 0x86e   :  { %v2275_v16 = vadd.f32 %v739_v59, %v689_v15  ;;  %v1826_v17 = vpop.f32.mrb[23].mxu0 }
 0x873   :  { %v787_v18 = vpop.f32.mrb[24].mxu0 }
 0x874   :  { %v843_v47 = vmul.f32 0.25, %v787_v18  ;;  %v1837_v20 = vpop.f32.mrb[25].mxu0 }
 0x875   :  { %v790_v21 = vpop.f32.mrb[26].mxu0 }
 0x876   :  { %v1838_v22 = vpop.f32.mrb[27].mxu0  ;;  %v845_v23 = vsel %vm2167_vm4, %v843_v47, -inf }
 0x877   :  { %v847_v24 = vsel %vm299_vm5, %v845_v23, -inf }
 0x878   :  { %848 = vmax.xlane.f32.xlu0 %v847_v24 }
 0x87c   :  { %863 = vadd.xlane.f32.xlu0 %v862_v26 }
 0x905   :  { %v849_v27 = vpop.xlane.xlu0 %848 }
 0x906   :  { %v853_v28 = vsub.f32 %v845_v23, %v849_v27 }
 0x908   :  { %v855_v29 = vmul.f32 1.442695, %v853_v28 }
 0x909   :  { %v864_v30 = vpop.xlane.xlu0 %863 }
 0x90a   :  { %1972 = vpow2.f32 %v855_v29 }
 0x90b   :  { %1974 = vrcp.f32 %v864_v30 }
 0x914   :  { %v1973_v31 = vpop.eup %1972 }
 0x915   :  { %v1975_v32 = vpop.eup %1974  ;;  %v859_v33 = vsel %vm299_vm5, %v1973_v31, 0.0 }
 0x916   :  { %v868_v34 = vmul.f32 %v1975_v32, %v1971_v25  ;;  %860 = vadd.xlane.f32.xlu0 %v859_v33 }
 0x918   :  { %v870_v39 = vpack.c.bf16 %v868_v34, %v868_v34 }
 0x91a   :  { %1854 = vmatmul.mubr.msk.bf16.vlgmr.msra.gmra.mrb[24].mxu1 %vm299_vm5, %v870_v39 }
 0x91b   :  { %1864 = vmatpush3.bf16.xpose.msra.mxu1 %v1028_v40  ;;  %1865 = vmatprep.mubr.msk.bf16.mxu1 %vm2016_vm1, %v2015_v36 }
 0x91c   :  { %1875 = vmatprep.subr.bf16.mxu1 %v2015_v36 }
 0x92c   :  { %871 = vrot.lane.b32.xlu0 %v2147_v56, %s2021_s11 }
 0x930   :  { %1020 = vrot.lane.b32.xlu0 %v2135_v44, %s2023_s16 }
 0x9a3   :  { %v861_v41 = vpop.xlane.xlu0 %860 }
 0x9a4   :  { %1976 = vrcp.f32 %v861_v41 }
 0x9a7   :  { %v872_v43 = vpop.permute.xlu0 %871 }
 0x9a8   :  { %v877_v45 = vsel %vm327_vm3, %v872_v43, 0 }
 0x9a9   :  { %1846 = vmatpush3.bf16.msra.mxu0 %v877_v45 }
 0x9aa   :  { %1857 = vmatprep.subr.bf16.mxu0 %v2015_v36 }
 0x9ab   :  { %v1021_v42 = vpop.permute.xlu0 %1020 }
 0x9ac   :  { %1866 = vmatmul.mubr.msk.bf16.vlgmr.msra.gmra.mrb[28].mxu1 %vm198_vm2, %v1021_v42 }
 0x9ad   :  { %1877 = vmatprep.mubr.msk.bf16.mxu1 %vm2016_vm1, %v2015_v36 }
 0x9ae   :  { %v1977_v46 = vpop.eup %1976 }
 0x9af   :  { %v867_v49 = vmul.f32 %v1977_v46, %v1973_v31 }
 0x9b1   :  { %v869_v50 = vpack.c.bf16 %v867_v49, %v867_v49  ;;  %v1921_v49 = vld [vmem:[%s2456_s3 + $0x18] sm:$0xff]  }
 0x9b3   :  { %1848 = vmatmul.mubr.msk.bf16.vlgmr.msra.gmra.mrb[28].mxu0 %vm299_vm5, %v869_v50 }
 0x9b4   :  { %1859 = vmatprep.mubr.msk.bf16.mxu0 %vm2016_vm1, %v2015_v36  ;;  %1858 = vmatpush3.bf16.msra.mxu0 %v1920_v54 }
 0x9b5   :  { %1869 = vmatprep.subr.bf16.mxu0 %v2015_v36 }
 0x9ed   :  { %v961_v44 = vpop.f32.mrb[24].mxu1 }
 0x9ee   :  { %v1855_v51 = vpop.f32.mrb[25].mxu1 }
 0x9ef   :  { %v964_v52 = vpop.f32.mrb[26].mxu1 }
 0x9f0   :  { %v1856_v53 = vpop.f32.mrb[27].mxu1 }
 0xa7f   :  { %v1064_v55 = vpop.f32.mrb[28].mxu1 }
 0xa80   :  { %v1120_v58 = vmul.f32 0.25, %v1064_v55  ;;  %v1867_v59 = vpop.f32.mrb[29].mxu1 }
 0xa81   :  { %v1067_v60 = vpop.f32.mrb[30].mxu1 }
 0xa82   :  { %v1868_v62 = vpop.f32.mrb[31].mxu1  ;;  %v1122_v63 = vsel %vm2167_vm4, %v1120_v58, -inf }
 0xa83   :  { %v1124_v2 = vsel %vm299_vm5, %v1122_v63, -inf }
 0xa84   :  { %1125 = vmax.xlane.f32.xlu0 %v1124_v2 }
 0xa86   :  { %v913_v4 = vpop.f32.mrb[28].mxu0 }
 0xa87   :  { %v967_v5 = vpack.c.bf16 %v961_v44, %v913_v4  ;;  %v1849_v6 = vpop.f32.mrb[29].mxu0 }
 0xa88   :  { %v916_v7 = vpop.f32.mrb[30].mxu0 }
 0xa89   :  { %v1850_v9 = vpop.f32.mrb[31].mxu0  ;;  %1860 = vmatmul.mubr.msk.bf16.vlgmr.msra.gmra.mrb[32].mxu0 %vm198_vm2, %v967_v5 }
 0xa8a   :  { %1870 = vmatpush3.bf16.xpose.msra.mxu0 %v1078_v8  ;;  %1871 = vmatprep.mubr.msk.bf16.mxu0 %vm2016_vm1, %v2015_v36 }
 0xa8b   :  { %1881 = vmatprep.subr.bf16.mxu0 %v2015_v36 }
 0xa91   :  { %1872 = vmatmul.mubr.msk.bf16.vlgmr.msra.gmra.mrb[36].mxu0 %vm198_vm2, %v1071_v10 }
 0xa92   :  { %1883 = vmatprep.mubr.msk.bf16.mxu0 %vm2016_vm1, %v2015_v36 }
 0xb11   :  { %v1126_v11 = vpop.xlane.xlu0 %1125 }
 0xb12   :  { %v1130_v12 = vsub.f32 %v1122_v63, %v1126_v11 }
 0xb14   :  { %v1132_v14 = vmul.f32 1.442695, %v1130_v12 }
 0xb16   :  { %1978 = vpow2.f32 %v1132_v14 }
 0xb20   :  { %v1979_v15 = vpop.eup %1978 }
 0xb21   :  { %v1136_v17 = vsel %vm299_vm5, %v1979_v15, 0.0 }
 0xb22   :  { %1137 = vadd.xlane.f32.xlu0 %v1136_v17 }
 0xb5c   :  { %v1011_v18 = vpop.f32.mrb[32].mxu0 }
 0xb5d   :  { %v1018_v47 = vadd.f32 %v1011_v18, %v2273_v13  ;;  %v1861_v20 = vpop.f32.mrb[33].mxu0 }
 0xb5e   :  { %v1014_v21 = vpop.f32.mrb[34].mxu0  ;;  %v1924_v20 = vld [vmem:[%s2458_s5 + $0x4] ss:$8 sps:$4 sm:$0xff]  }
 0xb5f   :  { %v1019_v22 = vadd.f32 %v1014_v21, %v2275_v16  ;;  %v1862_v23 = vpop.f32.mrb[35].mxu0  ;;  %v1922_v21 = vld [vmem:[%s2458_s5] ss:$8 sps:$4 sm:$0xff]  }
 0xb60   :  { %v1925_v23 = vld [vmem:[%s2458_s5 + $0x10] ss:$8 sps:$4 sm:$0xff]  }
 0xb64   :  { %v1114_v24 = vpop.f32.mrb[36].mxu0 }
 0xb65   :  { %v1121_v25 = vmul.f32 0.25, %v1114_v24  ;;  %v1873_v26 = vpop.f32.mrb[37].mxu0  ;;  %v1930_v24 = vld [vmem:[%s2458_s5 + $0x24] ss:$8 sps:$4 sm:$0xff]  }
 0xb66   :  { %v1117_v27 = vpop.f32.mrb[38].mxu0  ;;  %v1931_v26 = vld [vmem:[%s2458_s5 + $0x30] ss:$8 sps:$4 sm:$0xff]  }
 0xb67   :  { %v1874_v28 = vpop.f32.mrb[39].mxu0  ;;  %v1123_v29 = vsel %vm2167_vm4, %v1121_v25, -inf  ;;  %v1928_v25 = vld [vmem:[%s2458_s5 + $0x20] ss:$8 sps:$4 sm:$0xff]   ;;  %v1933_v27 = vld [vmem:[%s2458_s5 + $0x34] ss:$8 sps:$4 sm:$0xff]  }
 0xb68   :  { %v1127_v30 = vsel %vm299_vm5, %v1123_v29, -inf  ;;  %v1934_v28 = vld [vmem:[%s2460_s7 + $0x40] sm:$0xff]  }
 0xb69   :  { %1128 = vmax.xlane.f32.xlu1 %v1127_v30  ;;  %v1936_v30 = vld [vmem:[%s2460_s7 + $0x48] sm:$0xff]  }
 0xb7a   :  { %1196 = vrot.lane.b32.xlu1 %v2150_v57, %s2023_s16 }
 0xbaf   :  { %v1138_v61 = vpop.xlane.xlu0 %1137 }
 0xbf6   :  { %v1129_v13 = vpop.xlane.xlu1 %1128 }
 0xbf7   :  { %v1131_v31 = vsub.f32 %v1123_v29, %v1129_v13  ;;  %v1935_v29 = vld [vmem:[%s2460_s7] sm:$0xff]   ;;  %v1937_v13 = vld [vmem:[%s2460_s7 + $0x8] sm:$0xff]  }
 0xbf9   :  { %v1134_v32 = vmul.f32 1.442695, %v1131_v31  ;;  %v1938_v31 = vld [vmem:[%s2460_s7 + $0x50] sm:$0xff]  }
 0xbfa   :  { %v1197_v33 = vpop.permute.xlu1 %1196 }
 0xbfb   :  { %1980 = vpow2.f32 %v1134_v32  ;;  %v1202_v16 = vsel %vm327_vm3, %v1197_v33, 0  ;;  %v1939_v32 = vld [vmem:[%s2460_s7 + $0x10] sm:$0xff]   ;;  %v1940_v33 = vld [vmem:[%s2460_s7 + $0x58] sm:$0xff]  }
 0xbfc   :  { %1882 = vmatpush3.bf16.msra.mxu0 %v1202_v16  ;;  %1982 = vrcp.f32 %v1138_v61  ;;  %v1941_v16 = vld [vmem:[%s2460_s7 + $0x18] sm:$0xff]   ;;  %v1944_v61 = vld [vmem:[%s2460_s7 + $0x68] sm:$0xff]  }
 0xbfd   :  { %1398 = vmatprep.subr.bf16.mxu0 %v1924_v20 }
 0xc05   :  { %v1981_v34 = vpop.eup %1980 }
 0xc06   :  { %v1139_v38 = vsel %vm299_vm5, %v1981_v34, 0.0  ;;  %v1983_v39 = vpop.eup %1982 }
 0xc07   :  { %1140 = vadd.xlane.f32.xlu0 %v1139_v38  ;;  %v1144_v57 = vmul.f32 %v1983_v39, %v1979_v15  ;;  %v1943_v38 = vld [vmem:[%s2460_s7 + $0x20] sm:$0xff]  }
 0xc09   :  { %v1146_v45 = vpack.c.bf16 %v1144_v57, %v1144_v57 }
 0xc1d   :  { %1148 = vrot.lane.b32.xlu0 %v2147_v56, %s2023_s16 }
 0xc94   :  { %v1141_v40 = vpop.xlane.xlu0 %1140 }
 0xc95   :  { %1984 = vrcp.f32 %v1141_v40 }
 0xc98   :  { %v1149_v41 = vpop.permute.xlu0 %1148 }
 0xc99   :  { %v1154_v43 = vsel %vm327_vm3, %v1149_v41, 0 }
 0xc9a   :  { %1876 = vmatpush3.bf16.msra.mxu1 %v1154_v43 }
 0xc9b   :  { %1887 = vmatprep.subr.bf16.mxu1 %v2015_v36 }
 0xc9d   :  { %1878 = vmatmul.mubr.msk.bf16.vlgmr.msra.gmra.mrb[32].mxu1 %vm299_vm5, %v1146_v45 }
 0xc9e   :  { %1889 = vmatprep.mubr.msk.bf16.mxu1 %vm2016_vm1, %v2015_v36  ;;  %1888 = vmatpush3.bf16.msra.mxu1 %v1921_v49 }
 0xc9f   :  { %v1985_v42 = vpop.eup %1984  ;;  %1751 = vmatprep.subr.bf16.mxu1 %v1934_v28 }
 0xca0   :  { %v1145_v56 = vmul.f32 %v1985_v42, %v1981_v34  ;;  %v1942_v34 = vld [vmem:[%s2460_s7 + $0x60] sm:$0xff]  }
 0xca2   :  { %v1147_v46 = vpack.c.bf16 %v1145_v56, %v1145_v56 }
 0xca4   :  { %1884 = vmatmul.mubr.msk.bf16.vlgmr.msra.gmra.mrb[40].mxu0 %vm299_vm5, %v1147_v46 }
 0xca5   :  { %1430 = vmatprep.mubr.bf16.mxu0 %v2014_v19  ;;  %v1680_v19 = vld [vmem:[%s2457_s4] ss:$0 sm:$0xff]  ;;  %1399 = vmatpush1.bf16.msra.mxu0 %v1922_v21 }
 0xd70   :  { %v1190_v50 = vpop.f32.mrb[32].mxu1 }
 0xd71   :  { %v1879_v44 = vpop.f32.mrb[33].mxu1 }
 0xd72   :  { %v1193_v51 = vpop.f32.mrb[34].mxu1  ;;  %v1945_v44 = vld [vmem:[%s2460_s7 + $0x28] sm:$0xff]  }
 0xd73   :  { %v1880_v52 = vpop.f32.mrb[35].mxu1  ;;  %v1946_v51 = vld [vmem:[%s2460_s7 + $0x70] sm:$0xff]  }
 0xd74   :  { %v1947_v52 = vld [vmem:[%s2460_s7 + $0x30] sm:$0xff]  }
 0xd77   :  { %v1238_v53 = vpop.f32.mrb[40].mxu0 }
 0xd78   :  { %v1244_v54 = vpack.c.bf16 %v1238_v53, %v1190_v50  ;;  %v1885_v55 = vpop.f32.mrb[41].mxu0  ;;  %v1948_v53 = vld [vmem:[%s2460_s7 + $0x78] sm:$0xff]  }
 0xd79   :  { %v1241_v36 = vpop.f32.mrb[42].mxu0  ;;  %v1343_v55 = vld [vmem:[%s2459_s6] sm:$0x3] }
 0xd7a   :  { %v1886_v58 = vpop.f32.mrb[43].mxu0  ;;  %1890 = vmatmul.mubr.msk.bf16.vlgmr.msra.gmra.mrb[36].mxu1 %vm198_vm2, %v1244_v54  ;;  %v1949_v54 = vld [vmem:[%s2460_s7 + $0x38] sm:$0xff]   ;;  %v1348_v36 = vrot.slane %v1343_v55, %v77_v37 }
 0xd7b   :  { %1752 = vmatpush3.bf16.msra.mxu1 %v1935_v29  ;;  %v1352_v58 = vrot.slane %v1343_v55, %v81_v48 }
 0xd7c   :  { %1753 = vmatprep.subr.bf16.mxu1 %v1936_v30 }
 0xd7f   :  { %1754 = vmatpush3.bf16.msra.mxu1 %v1937_v13 }
 0xd80   :  { %1755 = vmatprep.subr.bf16.mxu1 %v1938_v31 }
 0xd83   :  { %1756 = vmatpush3.bf16.msra.mxu1 %v1939_v32 }
 0xd84   :  { %1757 = vmatprep.subr.bf16.mxu1 %v1940_v33 }
 0xd87   :  { %1758 = vmatpush3.bf16.msra.mxu1 %v1941_v16 }
 0xd88   :  { %1759 = vmatprep.subr.bf16.mxu1 %v1942_v34 }
 0xd8b   :  { %1760 = vmatpush3.bf16.msra.mxu1 %v1943_v38 }
 0xd8c   :  { %1761 = vmatprep.subr.bf16.mxu1 %v1944_v61 }
 0xd8f   :  { %1762 = vmatpush3.bf16.msra.mxu1 %v1945_v44 }
 0xd90   :  { %1763 = vmatprep.subr.bf16.mxu1 %v1946_v51 }
 0xd93   :  { %1764 = vmatpush3.bf16.msra.mxu1 %v1947_v52 }
 0xd94   :  { %1765 = vmatprep.subr.bf16.mxu1 %v1948_v53 }
 0xd97   :  { %1766 = vmatpush3.bf16.msra.mxu1 %v1949_v54 }
 0xe4d   :  { %v1288_v59 = vpop.f32.mrb[36].mxu1 }
 0xe4e   :  { %v1295_v60 = vadd.f32 %v1288_v59, %v1018_v47  ;;  %v1891_v62 = vpop.f32.mrb[37].mxu1 }
 0xe4f   :  { %v1291_v63 = vpop.f32.mrb[38].mxu1 }
 0xe50   :  { %v1304_v2 = vadd.f32 %v1680_v19, %v1295_v60  ;;  %v1296_v3 = vadd.f32 %v1291_v63, %v1019_v22  ;;  %v1892_v4 = vpop.f32.mrb[39].mxu1  ;;  %v1927_v22 = vld [vmem:[%s2458_s5 + $0x14] ss:$8 sps:$4 sm:$0xff]   ;;  %s1632_s5 = sshll.u32 %s2024_s20, 4  ;;  %s1633_s5 = int_to_ptr.vmem [resolvable:$true] %s1632_s5 }
 0xe51   :  { %1400 = vmatprep.subr.bf16.mxu0 %v1927_v22  ;;  %s1990_s21 = scalar_lea.vmem %s1633_s5, 256  ;;  %p1995_p1 = scmp.lt.s32.totalorder %s1633_s5, %s1633_s5 }
 0xe52   :  { %v2341_v5 = vadd.f32 %v1304_v2, %v2080_v0  ;;  %v1305_v6 = vadd.f32 %v1680_v19, %v1296_v3  ;;  %1401 = vmatpush1.bf16.msra.mxu0 %v1925_v23  ;;  %p1991_p0 = scmp.ne.s32.totalorder %s1633_s5, %s1990_s21  ;;  %p1996_p2 = scmp.lt.s32.totalorder %s1990_s21, %s1990_s21 }
 0xe53   :  { %1402 = vmatprep.subr.bf16.mxu0 %v1930_v24 }
 0xe54   :  { %v2344_v7 = vadd.f32 %v1305_v6, %v2085_v1  ;;  %v1308_v8 = vsel %vm36_vm0, %v2341_v5, 0.0  ;;  %p1997_p3 = por %p1996_p2, %p1995_p1 }
 0xe55   :  { %1309 = vadd.xlane.f32.xlu1 %v1308_v8 }
 0xe56   :  { %v1311_v9 = vsel %vm36_vm0, %v2344_v7, 0.0  ;;  %1403 = vmatpush1.bf16.msra.mxu0 %v1928_v25  ;;  %p1998_p4 = pnand %p1997_p3, %p1991_p0 }
 0xe57   :  { %1312 = vadd.xlane.f32.xlu0 %v1311_v9  ;;  %1404 = vmatprep.subr.bf16.mxu0 %v1933_v27 }
 0xe5a   :  { %1405 = vmatpush1.bf16.msra.mxu0 %v1931_v26 }
 0xee2   :  { %v1310_v10 = vpop.xlane.xlu1 %1309 }
 0xee3   :  { %v1314_v11 = vmul.f32 0.015625, %v1310_v10 }
 0xee4   :  { %v1313_v12 = vpop.xlane.xlu0 %1312 }
 0xee5   :  { %v1316_v14 = vsub.f32 %v2341_v5, %v1314_v11  ;;  %v1315_v15 = vmul.f32 0.015625, %v1313_v12 }
 0xee7   :  { %v1317_v0 = vsub.f32 %v2344_v7, %v1315_v15  ;;  %v1318_v17 = vmul.f32 %v1316_v14, %v1316_v14 }
 0xee9   :  { %v1320_v1 = vsel %vm36_vm0, %v1318_v17, 0.0  ;;  %v1319_v18 = vmul.f32 %v1317_v0, %v1317_v0 }
 0xeea   :  { %1321 = vadd.xlane.f32.xlu0 %v1320_v1 }
 0xeeb   :  { %v1323_v47 = vsel %vm36_vm0, %v1319_v18, 0.0 }
 0xeec   :  { %1324 = vadd.xlane.f32.xlu1 %v1323_v47 }
 0xf77   :  { %v1322_v39 = vpop.xlane.xlu0 %1321 }
 0xf78   :  { %v1326_v40 = vmul.f32 0.015625, %v1322_v39 }
 0xf79   :  { %v1325_v57 = vpop.xlane.xlu1 %1324 }
 0xf7a   :  { %v1328_v41 = vadd.f32 1e-05, %v1326_v40  ;;  %v1327_v43 = vmul.f32 0.015625, %v1325_v57 }
 0xf7c   :  { %1986 = vrsqrt.f32 %v1328_v41  ;;  %v1329_v45 = vadd.f32 1e-05, %v1327_v43 }
 0xf7e   :  { %1988 = vrsqrt.f32 %v1329_v45 }
 0xf86   :  { %v1987_v42 = vpop.eup %1986 }
 0xf87   :  { %v1332_v46 = vmul.f32 %v1987_v42, %v1316_v14 }
 0xf88   :  { %v1989_v56 = vpop.eup %1988 }
 0xf89   :  { %v1333_v49 = vmul.f32 %v1989_v56, %v1317_v0 }
 0xf8b   :  { %v1334_v50 = vpack.c.bf16 %v1333_v49, %v1332_v46 }
 0xf8d   :  { %1689 = vmatmul.mubr.msk.bf16.vlgmr.msra.gmra.mrb[44].mxu0 %vm36_vm0, %v1334_v50 }
0x1060   :  { %v1432_v59 = vpop.f32.mrb[44].mxu0 }
0x1061   :  { %v1433_v19 = vadd.f32 %v1432_v59, %v1348_v36  ;;  %v1434_v60 = vpop.f32.mrb[45].mxu0 }
0x1062   :  { %v1435_v62 = vadd.f32 %v1434_v60, %v1352_v58  ;;  %v1436_v63 = vpop.f32.mrb[46].mxu0 }
0x1063   :  { %v1437_v2 = vadd.f32 %v1436_v63, %v1348_v36  ;;  %v1438_v3 = vpop.f32.mrb[47].mxu0  ;;  %v1441_v6 = vmax.f32 %v1433_v19, 0.0 }
0x1064   :  { %v1439_v4 = vadd.f32 %v1438_v3, %v1352_v58  ;;  %v1442_v9 = vmax.f32 %v1435_v62, 0.0 }
0x1065   :  { %v1443_v8 = vmax.f32 %v1437_v2, 0.0 }
0x1066   :  { %v1444_v10 = vmax.f32 %v1439_v4, 0.0 }
0x1067   :  { %v1445_v11 = vpack.c.bf16 %v1443_v8, %v1441_v6 }
0x1068   :  { %v1446_v12 = vpack.c.bf16 %v1444_v10, %v1442_v9 }
0x106a   :  { %1614 = vmatprep.mubr.bf16.mxu1 %v1446_v12 }
0x106b   :  { %1615 = vmatmul.mubr.bf16.vlgmr.msra.gmra.mrb[40].mxu1 %v1445_v11 }
0x113e   :  { %v1767_v37 = vpop.f32.mrb[40].mxu1 }
0x113f   :  { %v1768_v48 = vpop.f32.mrb[41].mxu1 }
0x1140   :  { %v1769_v14 = vadd.f32 %v1768_v48, %v1767_v37  ;;  %v1770_v15 = vpop.f32.mrb[42].mxu1 }
0x1141   :  { %v1771_v0 = vpop.f32.mrb[43].mxu1 }
0x1142   :  { %v1617_v17 = vadd.f32 %v1769_v14, %v1690_v35  ;;  %v1772_v1 = vadd.f32 %v1771_v0, %v1770_v15 }
0x1144   :  { %v1623_v18 = vadd.f32 %v1617_v17, %v2341_v5  ;;  %v1620_v47 = vadd.f32 %v1772_v1, %v1690_v35 }
0x1146   :  { %1625 = vst.msk [vmem:[#allocation2] sm:$0xff] %vm36_vm0, %v1623_v18  ;;  %v1624_v20 = vadd.f32 %v1620_v47, %v2344_v7 }
0x1148   :  { %1626 = vst.msk [vmem:[#allocation2 + $0x8] sm:$0xff] %vm36_vm0, %v1624_v20 }
0x1149   :  { %2001 = shalt.err (!%p1998_p4)
}
0x114a   :  { %s2002_s3 = scalar_lea.hbm %s2462_s9, 256 }
0x114b   :  { %p2003_p5 = scmp.ne.s32.totalorder %s2462_s9, %s2002_s3  ;;  %p2006_p6 = scmp.lt.u32.totalorder %s2002_s3, %s2462_s9 }
0x114d   :  { %p2008_p7 = pnand %p2006_p6, %p2003_p5 }
0x114f   :  { %2011 = shalt.err (!%p2008_p7)
}
0x1150   :  { %s2025_s26 = smov 128   ;;  %s2026_s27 = smov 8  }
0x1151   :  { %1638 = dma.vmem_to_hbm [thread:$0]  %s1633_s5, 256, %s2462_s9, [#allocation3], %s2025_s26, %s2025_s26, %s2026_s27  }
0x1152   :  { %2012 = dma.done.wait [#allocation3], 256  }
0x1153   :  { %2013 = vsyncadd [#allocation3], 4294967040 }
0x1154   :  { %1642 = vsyncpa [#allocation3], 1 }

</bundles_post_ra>
